<compile_context>
chip_gen: v7x
topology: tpu7x:2x2x1
jax: 0.10.0
libtpu: 0.0.40
codegen_flags: <defaults>
</compile_context>

<pallas_src>
import functools

import numpy as np
import jax
import jax.numpy as jnp
from jax import lax
from jax.experimental import pallas as pl
from jax.experimental.pallas import tpu as pltpu
from jax.scipy.linalg import block_diag

INCEPTION = ("skip_connect", "conv_3", "conv_5", "max_pool_3", "avg_pool_3")
BN_EPS = 1e-5
NUM_TAPS = 5  # unified pad-2 tap frame shared by conv_3 / conv_5 / pools / skip

_COMPILER_PARAMS = pltpu.CompilerParams(
    dimension_semantics=("arbitrary",),
    vmem_limit_bytes=32 * 1024 * 1024,   # well under v7x's 64 MiB physical VMEM
)


def _vmem_spec(shape):
    zeros = (0,) * len(shape)
    return pl.BlockSpec(shape, lambda i, z=zeros: z)


# ---------------------------------------------------------------------------
# The single fused kernel
# ---------------------------------------------------------------------------
def _bn_stats(y):
    """Two-pass (shifted) batch statistics over M = N*L rows; per-channel columns."""
    inv_m = 1.0 / y.shape[0]
    mean = jnp.sum(y, axis=0, keepdims=True) * inv_m
    d = y - mean
    var = jnp.sum(d * d, axis=0, keepdims=True) * inv_m
    return mean, lax.rsqrt(var + BN_EPS)


def _inception_kernel(*refs, cfg):
    it = iter(refs)
    xtap_ref, stemw_ref, stemg_ref, stemb_ref = (next(it) for _ in range(4))
    blk_refs = [tuple(next(it) for _ in range(9)) for _ in cfg]
    gpool_ref, gate_ref, clsw_ref, clsb_ref = (next(it) for _ in range(4))
    logits_ref = next(it)
    feat_ref = next(it)

    def conv1x1_bn_relu(h, w_ref, g_ref, b_ref):
        # 1x1 conv folded over M = N*L + training-mode BN (affine=True) + ReLU
        y = jnp.dot(h.astype(jnp.bfloat16), w_ref[...],
                    preferred_element_type=jnp.float32)
        mean, inv = _bn_stats(y)
        scale = g_ref[...] * inv
        shift = b_ref[...] - mean * scale
        return jnp.maximum(y * scale + shift, 0.0)

    # ---- stem: 5-tap conv (Cin=1) as ONE matmul, then BN + ReLU ------------------
    h = jnp.dot(xtap_ref[...], stemw_ref[...], preferred_element_type=jnp.float32)
    mean, inv = _bn_stats(h)
    scale = stemg_ref[...] * inv
    h = jnp.maximum(h * scale + (stemb_ref[...] - mean * scale), 0.0)   # (N*L, C0)

    # ---- blocks -------------------------------------------------------------------
    for (nb, cb, _stride, _lin, _lout), rb in zip(cfg, blk_refs):
        (prew_ref, preg_ref, preb_ref, a_ref, convw_ref, opw_ref,
         postw_ref, postg_ref, postb_ref) = rb
        C = nb * cb

        # all nb pre 1x1 convs + their BNs + ReLU in ONE matmul (branch channels are
        # concatenated on the output columns; per-channel BN == per-branch BN).
        s = conv1x1_bn_relu(h, prew_ref, preg_ref, preb_ref)            # (N*Lin, C)

        # taps via constant 0/1 selection matmuls: zero padding, the stride-2
        # subsample and the N-fold in one exact f32 MXU op per tap (no sublane
        # relayout slicing, no wrapper-side pad / phase-split HBM copies).  Pools
        # and skip need the taps as standalone tensors anyway.
        taps = [jnp.dot(a_ref[t], s, preferred_element_type=jnp.float32)
                for t in range(NUM_TAPS)]                               # (N*Lout, C) each
        taps_bf = [t.astype(jnp.bfloat16) for t in taps]                # cast once per buffer

        # conv_3 + conv_5 of ALL branches: one matmul per tap against the fused
        # block-diagonal weight; c3 in the first C output columns, c5 in the rest.
        c35 = jnp.dot(taps_bf[0], convw_ref[0], preferred_element_type=jnp.float32)
        for t in range(1, NUM_TAPS):
            c35 = c35 + jnp.dot(taps_bf[t], convw_ref[t],
                                preferred_element_type=jnp.float32)
        c3, c5 = c35[:, :C], c35[:, C:]

        mx = jnp.maximum(jnp.maximum(taps[1], taps[2]), taps[3])        # max_pool_3 (input >= 0)
        av = (taps[1] + taps[2] + taps[3]) * (1.0 / 3.0)                # avg_pool_3 (count_include_pad)
        sk = taps[2]                                                    # skip / strided subsample

        opw = opw_ref[...]                                              # (5, C) arch-weight rows

        def bn_weighted(y, wrow, relu):
            # affine=False batch BN with the positive architecture weight folded
            # into scale/shift (w*relu(z) == relu(w*z) since softmax weights > 0).
            mean_b, inv_b = _bn_stats(y)
            sc = wrow * inv_b
            z = y * sc - mean_b * sc
            return jnp.maximum(z, 0.0) if relu else z

        mix = opw[0:1] * sk
        mix = mix + bn_weighted(c3, opw[1:2], True)
        mix = mix + bn_weighted(c5, opw[2:3], True)
        mix = mix + bn_weighted(mx, opw[3:4], False)
        mix = mix + bn_weighted(av, opw[4:5], False)                    # (N*Lout, C)

        # post 1x1 conv over the (implicit) channel concat of all branches + BN + ReLU
        h = conv1x1_bn_relu(mix, postw_ref, postg_ref, postb_ref)       # (N*Lout, C_out)

    # ---- head: global average pool (constant matmul) + sigmoid gate + classifier --
    pooled = jnp.dot(gpool_ref[...], h, preferred_element_type=jnp.float32)   # (N, Cf)
    gate = 1.0 / (1.0 + jnp.exp(-gate_ref[...]))
    feat = pooled * gate
    feat_ref[...] = feat
    logits_ref[...] = (jnp.dot(feat, clsw_ref[...], preferred_element_type=jnp.float32)
                       + clsb_ref[...])


# ---------------------------------------------------------------------------
# Constant selection matrices (built once per static shape, with numpy)
# ---------------------------------------------------------------------------
def _build_tap_mats(n, lin, lout, stride):
    """A[t] @ x_folded gives tap t: x[n, stride*o + t - 2] with zero padding, N-folded."""
    a = np.zeros((NUM_TAPS, n * lout, n * lin), np.float32)
    for t in range(NUM_TAPS):
        for s in range(n):
            for o in range(lout):
                j = stride * o + t - 2
                if 0 <= j < lin:
                    a[t, s * lout + o, s * lin + j] = 1.0
    return jnp.asarray(a)


def _build_pool_mat(n, l):
    """G @ x_folded == per-sample mean over length (AdaptiveAvgPool1d(1))."""
    g = np.zeros((n, n * l), np.float32)
    for s in range(n):
        g[s, s * l:(s + 1) * l] = 1.0 / l
    return jnp.asarray(g)


# ---------------------------------------------------------------------------
# Parameters (matches the PyTorch module's initialization)
# ---------------------------------------------------------------------------
def kaiming_normal(key, shape):
    cout, _, k = shape                       # fan_out mode for Conv1d (Cout, Cin, k)
    std = (2.0 / (cout * k)) ** 0.5
    return std * jax.random.normal(key, shape, jnp.float32)


def init_params(key, C=16, num_blocks=2, classes=4):
    keys = iter(jax.random.split(key, 256))
    params = {
        "stem_w": kaiming_normal(next(keys), (C, 1, 5)),
        "stem_gamma": jnp.ones((C,), jnp.float32),
        "stem_beta": jnp.zeros((C,), jnp.float32),
    }
    blocks = []
    c_cur = C
    for i in range(num_blocks):
        reduction = (i % 2 != 0)
        c_in = c_cur
        c_out = c_cur * 2 if reduction else c_cur
        nb = 2 if reduction else 4
        cb = c_out // nb
        bp = {
            "pre": [],
            "branch": [],
            "post_w": kaiming_normal(next(keys), (c_out, cb * nb, 1)),
            "post_gamma": jnp.ones((c_out,), jnp.float32),
            "post_beta": jnp.zeros((c_out,), jnp.float32),
        }
        for _ in range(nb):
            bp["pre"].append({
                "w": kaiming_normal(next(keys), (cb, c_in, 1)),
                "gamma": jnp.ones((cb,), jnp.float32),
                "beta": jnp.zeros((cb,), jnp.float32),
            })
            bp["branch"].append({
                "conv3_w": kaiming_normal(next(keys), (cb, cb, 3)),
                "conv5_w": kaiming_normal(next(keys), (cb, cb, 5)),
            })
        blocks.append(bp)
        c_cur = c_out
    params["blocks"] = blocks
    num_ops = len(INCEPTION)
    params["alphas_normal"] = 0.001 * jax.random.normal(next(keys), (4, num_ops), jnp.float32)
    params["alphas_reduce"] = 0.001 * jax.random.normal(next(keys), (2, num_ops), jnp.float32)
    params["alphas_features"] = 0.001 * jax.random.normal(next(keys), (1, c_cur), jnp.float32)
    params["cls_w"] = 0.01 * jax.random.normal(next(keys), (classes, c_cur), jnp.float32)
    params["cls_b"] = jnp.zeros((classes,), jnp.float32)
    return params


# ---------------------------------------------------------------------------
# Forward pass: builds the fused-weight operands and issues ONE pallas_call
# ---------------------------------------------------------------------------
def inception_forward(params, x_ncl):
    N, _, L = x_ncl.shape
    C0 = params["stem_w"].shape[0]

    inputs = []
    # Stem: 5-tap matrix of the 1-channel raw input built in the wrapper (only ~5x of a
    # 128-byte input); turns the stem into a single MXU matmul with no edge handling.
    x_pad = jnp.pad(x_ncl[:, 0, :].astype(jnp.float32), ((0, 0), (2, 2)))
    x_tap = jnp.stack([x_pad[:, t:t + L] for t in range(NUM_TAPS)], axis=-1)
    inputs.append(x_tap.reshape(N * L, NUM_TAPS))
    inputs.append(jnp.transpose(params["stem_w"][:, 0, :]).astype(jnp.float32))   # (5, C0)
    inputs.append(params["stem_gamma"].reshape(1, C0).astype(jnp.float32))
    inputs.append(params["stem_beta"].reshape(1, C0).astype(jnp.float32))

    cfg = []
    l_cur, c_cur = L, C0
    for i, bp in enumerate(params["blocks"]):
        reduction = (i % 2 != 0)
        nb = 2 if reduction else 4
        stride = 2 if reduction else 1
        c_in = c_cur
        c_out = c_cur * 2 if reduction else c_cur
        cb = c_out // nb
        lout = l_cur // stride
        cfg.append((nb, cb, stride, l_cur, lout))

        # all branches' pre 1x1 conv weights / BN params concatenated on output channels
        prew = jnp.concatenate([p["w"][:, :, 0].T for p in bp["pre"]], axis=1)       # (c_in, nb*cb)
        preg = jnp.concatenate([p["gamma"] for p in bp["pre"]]).reshape(1, nb * cb)
        preb = jnp.concatenate([p["beta"] for p in bp["pre"]]).reshape(1, nb * cb)

        # per-tap fused conv weight: block-diagonal over branches; conv_3 fills the first
        # nb*cb output columns (taps 1..3 only), conv_5 fills the last nb*cb columns.
        tap_ws = []
        for t in range(NUM_TAPS):
            w5 = block_diag(*[b["conv5_w"][:, :, t].T for b in bp["branch"]])
            if 1 <= t <= 3:
                w3 = block_diag(*[b["conv3_w"][:, :, t - 1].T for b in bp["branch"]])
            else:
                w3 = jnp.zeros((nb * cb, nb * cb), jnp.float32)
            tap_ws.append(jnp.concatenate([w3, w5], axis=1))
        convw = jnp.stack(tap_ws, axis=0)                                            # (5, nb*cb, 2*nb*cb)

        # architecture weights (softmax over ops, > 0) expanded to per-channel rows
        alphas = params["alphas_reduce"] if reduction else params["alphas_normal"]
        w_arch = jax.nn.softmax(alphas, axis=-1)[:nb]                                # (nb, 5)
        opw = jnp.repeat(w_arch.T, cb, axis=1)                                       # (5, nb*cb)

        postw = bp["post_w"][:, :, 0].T                                              # (nb*cb, c_out)
        postg = bp["post_gamma"].reshape(1, c_out)
        postb = bp["post_beta"].reshape(1, c_out)

        inputs += [
            prew.astype(jnp.bfloat16), preg.astype(jnp.float32), preb.astype(jnp.float32),
            _build_tap_mats(N, l_cur, lout, stride),
            convw.astype(jnp.bfloat16),
            opw.astype(jnp.float32),
            postw.astype(jnp.bfloat16), postg.astype(jnp.float32), postb.astype(jnp.float32),
        ]
        l_cur, c_cur = lout, c_out
        del c_in

    classes = params["cls_w"].shape[0]
    inputs += [
        _build_pool_mat(N, l_cur),
        params["alphas_features"].reshape(1, c_cur).astype(jnp.float32),
        params["cls_w"].T.astype(jnp.float32),
        params["cls_b"].reshape(1, classes).astype(jnp.float32),
    ]

    kernel = functools.partial(_inception_kernel, cfg=tuple(cfg))
    logits, feats = pl.pallas_call(
        kernel,
        grid=(1,),
        in_specs=[_vmem_spec(a.shape) for a in inputs],
        out_specs=(_vmem_spec((N, classes)), _vmem_spec((N, c_cur))),
        out_shape=(jax.ShapeDtypeStruct((N, classes), jnp.float32),
                   jax.ShapeDtypeStruct((N, c_cur), jnp.float32)),
        compiler_params=_COMPILER_PARAMS,
    )(*inputs)
    return logits, feats


if __name__ == "__main__":
    key = jax.random.PRNGKey(0)
    pkey, xkey = jax.random.split(key)
    params = init_params(pkey, C=16, num_blocks=2, classes=4)
    x = jax.random.normal(xkey, (2, 1, 16), jnp.float32)     # (N, 1, L) -- PyTorch NCL
    logits, feats = jax.jit(inception_forward)(params, x)
    jax.block_until_ready((logits, feats))
    assert logits.shape == (2, 4) and feats.shape == (2, 32)
    assert bool(jnp.all(jnp.isfinite(logits))) and bool(jnp.all(jnp.isfinite(feats)))
    print("KERNEL_OK")
</pallas_src>

<mosaic_0001>
module attributes {stable_mosaic.version = 11 : i64} {
  func.func @_inception_kernel(%arg0: i32, %arg1: memref<32x5xf32, #tpu.memory_space<vmem>>, %arg2: memref<5x16xf32, #tpu.memory_space<vmem>>, %arg3: memref<1x16xf32, #tpu.memory_space<vmem>>, %arg4: memref<1x16xf32, #tpu.memory_space<vmem>>, %arg5: memref<16x16xbf16, #tpu.memory_space<vmem>>, %arg6: memref<1x16xf32, #tpu.memory_space<vmem>>, %arg7: memref<1x16xf32, #tpu.memory_space<vmem>>, %arg8: memref<5x32x32xf32, #tpu.memory_space<vmem>>, %arg9: memref<5x16x32xbf16, #tpu.memory_space<vmem>>, %arg10: memref<5x16xf32, #tpu.memory_space<vmem>>, %arg11: memref<16x16xbf16, #tpu.memory_space<vmem>>, %arg12: memref<1x16xf32, #tpu.memory_space<vmem>>, %arg13: memref<1x16xf32, #tpu.memory_space<vmem>>, %arg14: memref<16x32xbf16, #tpu.memory_space<vmem>>, %arg15: memref<1x32xf32, #tpu.memory_space<vmem>>, %arg16: memref<1x32xf32, #tpu.memory_space<vmem>>, %arg17: memref<5x16x32xf32, #tpu.memory_space<vmem>>, %arg18: memref<5x32x64xbf16, #tpu.memory_space<vmem>>, %arg19: memref<5x32xf32, #tpu.memory_space<vmem>>, %arg20: memref<32x32xbf16, #tpu.memory_space<vmem>>, %arg21: memref<1x32xf32, #tpu.memory_space<vmem>>, %arg22: memref<1x32xf32, #tpu.memory_space<vmem>>, %arg23: memref<2x16xf32, #tpu.memory_space<vmem>>, %arg24: memref<1x32xf32, #tpu.memory_space<vmem>>, %arg25: memref<32x4xf32, #tpu.memory_space<vmem>>, %arg26: memref<1x4xf32, #tpu.memory_space<vmem>>, %arg27: memref<2x4xf32, #tpu.memory_space<vmem>>, %arg28: memref<2x32xf32, #tpu.memory_space<vmem>>) attributes {dimension_semantics = [#tpu.dimension_semantics<arbitrary>], iteration_bounds = array<i64: 1>, scalar_prefetch = 0 : i64, scratch_operands = 0 : i64, tpu.core_type = #tpu.core_type<tc>, window_params = [{pipeline_mode = #tpu.pipeline_mode<synchronous>, transform_indices = @transform_0, window_bounds = array<i64: 32, 5>}, {pipeline_mode = #tpu.pipeline_mode<synchronous>, transform_indices = @transform_1, window_bounds = array<i64: 5, 16>}, {pipeline_mode = #tpu.pipeline_mode<synchronous>, transform_indices = @transform_2, window_bounds = array<i64: 1, 16>}, {pipeline_mode = #tpu.pipeline_mode<synchronous>, transform_indices = @transform_3, window_bounds = array<i64: 1, 16>}, {pipeline_mode = #tpu.pipeline_mode<synchronous>, transform_indices = @transform_4, window_bounds = array<i64: 16, 16>}, {pipeline_mode = #tpu.pipeline_mode<synchronous>, transform_indices = @transform_5, window_bounds = array<i64: 1, 16>}, {pipeline_mode = #tpu.pipeline_mode<synchronous>, transform_indices = @transform_6, window_bounds = array<i64: 1, 16>}, {pipeline_mode = #tpu.pipeline_mode<synchronous>, transform_indices = @transform_7, window_bounds = array<i64: 5, 32, 32>}, {pipeline_mode = #tpu.pipeline_mode<synchronous>, transform_indices = @transform_8, window_bounds = array<i64: 5, 16, 32>}, {pipeline_mode = #tpu.pipeline_mode<synchronous>, transform_indices = @transform_9, window_bounds = array<i64: 5, 16>}, {pipeline_mode = #tpu.pipeline_mode<synchronous>, transform_indices = @transform_10, window_bounds = array<i64: 16, 16>}, {pipeline_mode = #tpu.pipeline_mode<synchronous>, transform_indices = @transform_11, window_bounds = array<i64: 1, 16>}, {pipeline_mode = #tpu.pipeline_mode<synchronous>, transform_indices = @transform_12, window_bounds = array<i64: 1, 16>}, {pipeline_mode = #tpu.pipeline_mode<synchronous>, transform_indices = @transform_13, window_bounds = array<i64: 16, 32>}, {pipeline_mode = #tpu.pipeline_mode<synchronous>, transform_indices = @transform_14, window_bounds = array<i64: 1, 32>}, {pipeline_mode = #tpu.pipeline_mode<synchronous>, transform_indices = @transform_15, window_bounds = array<i64: 1, 32>}, {pipeline_mode = #tpu.pipeline_mode<synchronous>, transform_indices = @transform_16, window_bounds = array<i64: 5, 16, 32>}, {pipeline_mode = #tpu.pipeline_mode<synchronous>, transform_indices = @transform_17, window_bounds = array<i64: 5, 32, 64>}, {pipeline_mode = #tpu.pipeline_mode<synchronous>, transform_indices = @transform_18, window_bounds = array<i64: 5, 32>}, {pipeline_mode = #tpu.pipeline_mode<synchronous>, transform_indices = @transform_19, window_bounds = array<i64: 32, 32>}, {pipeline_mode = #tpu.pipeline_mode<synchronous>, transform_indices = @transform_20, window_bounds = array<i64: 1, 32>}, {pipeline_mode = #tpu.pipeline_mode<synchronous>, transform_indices = @transform_21, window_bounds = array<i64: 1, 32>}, {pipeline_mode = #tpu.pipeline_mode<synchronous>, transform_indices = @transform_22, window_bounds = array<i64: 2, 16>}, {pipeline_mode = #tpu.pipeline_mode<synchronous>, transform_indices = @transform_23, window_bounds = array<i64: 1, 32>}, {pipeline_mode = #tpu.pipeline_mode<synchronous>, transform_indices = @transform_24, window_bounds = array<i64: 32, 4>}, {pipeline_mode = #tpu.pipeline_mode<synchronous>, transform_indices = @transform_25, window_bounds = array<i64: 1, 4>}, {pipeline_mode = #tpu.pipeline_mode<synchronous>, transform_indices = @transform_26, window_bounds = array<i64: 2, 4>}, {pipeline_mode = #tpu.pipeline_mode<synchronous>, transform_indices = @transform_27, window_bounds = array<i64: 2, 32>}]} {
    %c0 = arith.constant 0 : index
    %c0_0 = arith.constant 0 : index
    %0 = vector.load %arg1[%c0, %c0_0] : memref<32x5xf32, #tpu.memory_space<vmem>>, vector<32x5xf32>
    %c0_1 = arith.constant 0 : index
    %c0_2 = arith.constant 0 : index
    %1 = vector.load %arg2[%c0_1, %c0_2] : memref<5x16xf32, #tpu.memory_space<vmem>>, vector<5x16xf32>
    %cst = arith.constant dense<0.000000e+00> : vector<32x16xf32>
    %2 = tpu.matmul %0, %1, %cst {dimension_numbers = #tpu.dot_dimension_numbers<[1], [0], [0], [1], [0, 0, 1, 1], [], []>} : vector<32x5xf32>, vector<5x16xf32>, vector<32x16xf32> -> vector<32x16xf32>
    %cst_3 = arith.constant dense<0.000000e+00> : vector<16xf32>
    %3 = vector.multi_reduction <add>, %2, %cst_3 [0] : vector<32x16xf32> to vector<16xf32>
    %4 = vector.shape_cast %3 : vector<16xf32> to vector<1x16xf32>
    %cst_4 = arith.constant 3.125000e-02 : f32
    %5 = vector.broadcast %cst_4 : f32 to vector<1x16xf32>
    %6 = arith.mulf %4, %5 : vector<1x16xf32>
    %7 = vector.broadcast %6 : vector<1x16xf32> to vector<32x16xf32>
    %8 = arith.subf %2, %7 : vector<32x16xf32>
    %9 = arith.mulf %8, %8 : vector<32x16xf32>
    %cst_5 = arith.constant dense<0.000000e+00> : vector<16xf32>
    %10 = vector.multi_reduction <add>, %9, %cst_5 [0] : vector<32x16xf32> to vector<16xf32>
    %11 = vector.shape_cast %10 : vector<16xf32> to vector<1x16xf32>
    %cst_6 = arith.constant 3.125000e-02 : f32
    %12 = vector.broadcast %cst_6 : f32 to vector<1x16xf32>
    %13 = arith.mulf %11, %12 : vector<1x16xf32>
    %cst_7 = arith.constant 9.99999974E-6 : f32
    %14 = vector.broadcast %cst_7 : f32 to vector<1x16xf32>
    %15 = arith.addf %13, %14 : vector<1x16xf32>
    %16 = math.rsqrt %15 : vector<1x16xf32>
    %c0_8 = arith.constant 0 : index
    %c0_9 = arith.constant 0 : index
    %17 = vector.load %arg3[%c0_8, %c0_9] : memref<1x16xf32, #tpu.memory_space<vmem>>, vector<1x16xf32>
    %18 = arith.mulf %17, %16 : vector<1x16xf32>
    %19 = vector.broadcast %18 : vector<1x16xf32> to vector<32x16xf32>
    %20 = arith.mulf %2, %19 : vector<32x16xf32>
    %c0_10 = arith.constant 0 : index
    %c0_11 = arith.constant 0 : index
    %21 = vector.load %arg4[%c0_10, %c0_11] : memref<1x16xf32, #tpu.memory_space<vmem>>, vector<1x16xf32>
    %22 = arith.mulf %6, %18 : vector<1x16xf32>
    %23 = arith.subf %21, %22 : vector<1x16xf32>
    %24 = vector.broadcast %23 : vector<1x16xf32> to vector<32x16xf32>
    %25 = arith.addf %20, %24 : vector<32x16xf32>
    %cst_12 = arith.constant 0.000000e+00 : f32
    %26 = vector.broadcast %cst_12 : f32 to vector<32x16xf32>
    %27 = arith.maximumf %25, %26 : vector<32x16xf32>
    %28 = arith.truncf %27 : vector<32x16xf32> to vector<32x16xbf16>
    %c0_13 = arith.constant 0 : index
    %c0_14 = arith.constant 0 : index
    %29 = vector.load %arg5[%c0_13, %c0_14] : memref<16x16xbf16, #tpu.memory_space<vmem>>, vector<16x16xbf16>
    %cst_15 = arith.constant dense<0.000000e+00> : vector<32x16xf32>
    %30 = tpu.matmul %28, %29, %cst_15 {dimension_numbers = #tpu.dot_dimension_numbers<[1], [0], [0], [1], [0, 0, 1, 1], [], []>} : vector<32x16xbf16>, vector<16x16xbf16>, vector<32x16xf32> -> vector<32x16xf32>
    %cst_16 = arith.constant dense<0.000000e+00> : vector<16xf32>
    %31 = vector.multi_reduction <add>, %30, %cst_16 [0] : vector<32x16xf32> to vector<16xf32>
    %32 = vector.shape_cast %31 : vector<16xf32> to vector<1x16xf32>
    %cst_17 = arith.constant 3.125000e-02 : f32
    %33 = vector.broadcast %cst_17 : f32 to vector<1x16xf32>
    %34 = arith.mulf %32, %33 : vector<1x16xf32>
    %35 = vector.broadcast %34 : vector<1x16xf32> to vector<32x16xf32>
    %36 = arith.subf %30, %35 : vector<32x16xf32>
    %37 = arith.mulf %36, %36 : vector<32x16xf32>
    %cst_18 = arith.constant dense<0.000000e+00> : vector<16xf32>
    %38 = vector.multi_reduction <add>, %37, %cst_18 [0] : vector<32x16xf32> to vector<16xf32>
    %39 = vector.shape_cast %38 : vector<16xf32> to vector<1x16xf32>
    %cst_19 = arith.constant 3.125000e-02 : f32
    %40 = vector.broadcast %cst_19 : f32 to vector<1x16xf32>
    %41 = arith.mulf %39, %40 : vector<1x16xf32>
    %cst_20 = arith.constant 9.99999974E-6 : f32
    %42 = vector.broadcast %cst_20 : f32 to vector<1x16xf32>
    %43 = arith.addf %41, %42 : vector<1x16xf32>
    %44 = math.rsqrt %43 : vector<1x16xf32>
    %c0_21 = arith.constant 0 : index
    %c0_22 = arith.constant 0 : index
    %45 = vector.load %arg6[%c0_21, %c0_22] : memref<1x16xf32, #tpu.memory_space<vmem>>, vector<1x16xf32>
    %46 = arith.mulf %45, %44 : vector<1x16xf32>
    %c0_23 = arith.constant 0 : index
    %c0_24 = arith.constant 0 : index
    %47 = vector.load %arg7[%c0_23, %c0_24] : memref<1x16xf32, #tpu.memory_space<vmem>>, vector<1x16xf32>
    %48 = arith.mulf %34, %46 : vector<1x16xf32>
    %49 = arith.subf %47, %48 : vector<1x16xf32>
    %50 = vector.broadcast %46 : vector<1x16xf32> to vector<32x16xf32>
    %51 = arith.mulf %30, %50 : vector<32x16xf32>
    %52 = vector.broadcast %49 : vector<1x16xf32> to vector<32x16xf32>
    %53 = arith.addf %51, %52 : vector<32x16xf32>
    %cst_25 = arith.constant 0.000000e+00 : f32
    %54 = vector.broadcast %cst_25 : f32 to vector<32x16xf32>
    %55 = arith.maximumf %53, %54 : vector<32x16xf32>
    %c0_26 = arith.constant 0 : index
    %c0_27 = arith.constant 0 : index
    %c0_28 = arith.constant 0 : index
    %56 = vector.load %arg8[%c0_26, %c0_27, %c0_28] : memref<5x32x32xf32, #tpu.memory_space<vmem>>, vector<1x32x32xf32>
    %57 = vector.shape_cast %56 : vector<1x32x32xf32> to vector<32x32xf32>
    %cst_29 = arith.constant dense<0.000000e+00> : vector<32x16xf32>
    %58 = tpu.matmul %57, %55, %cst_29 {dimension_numbers = #tpu.dot_dimension_numbers<[1], [0], [0], [1], [0, 0, 1, 1], [], []>} : vector<32x32xf32>, vector<32x16xf32>, vector<32x16xf32> -> vector<32x16xf32>
    %c1 = arith.constant 1 : index
    %c0_30 = arith.constant 0 : index
    %c0_31 = arith.constant 0 : index
    %59 = vector.load %arg8[%c1, %c0_30, %c0_31] : memref<5x32x32xf32, #tpu.memory_space<vmem>>, vector<1x32x32xf32>
    %60 = vector.shape_cast %59 : vector<1x32x32xf32> to vector<32x32xf32>
    %cst_32 = arith.constant dense<0.000000e+00> : vector<32x16xf32>
    %61 = tpu.matmul %60, %55, %cst_32 {dimension_numbers = #tpu.dot_dimension_numbers<[1], [0], [0], [1], [0, 0, 1, 1], [], []>} : vector<32x32xf32>, vector<32x16xf32>, vector<32x16xf32> -> vector<32x16xf32>
    %c2 = arith.constant 2 : index
    %c0_33 = arith.constant 0 : index
    %c0_34 = arith.constant 0 : index
    %62 = vector.load %arg8[%c2, %c0_33, %c0_34] : memref<5x32x32xf32, #tpu.memory_space<vmem>>, vector<1x32x32xf32>
    %63 = vector.shape_cast %62 : vector<1x32x32xf32> to vector<32x32xf32>
    %cst_35 = arith.constant dense<0.000000e+00> : vector<32x16xf32>
    %64 = tpu.matmul %63, %55, %cst_35 {dimension_numbers = #tpu.dot_dimension_numbers<[1], [0], [0], [1], [0, 0, 1, 1], [], []>} : vector<32x32xf32>, vector<32x16xf32>, vector<32x16xf32> -> vector<32x16xf32>
    %c3 = arith.constant 3 : index
    %c0_36 = arith.constant 0 : index
    %c0_37 = arith.constant 0 : index
    %65 = vector.load %arg8[%c3, %c0_36, %c0_37] : memref<5x32x32xf32, #tpu.memory_space<vmem>>, vector<1x32x32xf32>
    %66 = vector.shape_cast %65 : vector<1x32x32xf32> to vector<32x32xf32>
    %cst_38 = arith.constant dense<0.000000e+00> : vector<32x16xf32>
    %67 = tpu.matmul %66, %55, %cst_38 {dimension_numbers = #tpu.dot_dimension_numbers<[1], [0], [0], [1], [0, 0, 1, 1], [], []>} : vector<32x32xf32>, vector<32x16xf32>, vector<32x16xf32> -> vector<32x16xf32>
    %c4 = arith.constant 4 : index
    %c0_39 = arith.constant 0 : index
    %c0_40 = arith.constant 0 : index
    %68 = vector.load %arg8[%c4, %c0_39, %c0_40] : memref<5x32x32xf32, #tpu.memory_space<vmem>>, vector<1x32x32xf32>
    %69 = vector.shape_cast %68 : vector<1x32x32xf32> to vector<32x32xf32>
    %cst_41 = arith.constant dense<0.000000e+00> : vector<32x16xf32>
    %70 = tpu.matmul %69, %55, %cst_41 {dimension_numbers = #tpu.dot_dimension_numbers<[1], [0], [0], [1], [0, 0, 1, 1], [], []>} : vector<32x32xf32>, vector<32x16xf32>, vector<32x16xf32> -> vector<32x16xf32>
    %71 = arith.truncf %58 : vector<32x16xf32> to vector<32x16xbf16>
    %72 = arith.truncf %61 : vector<32x16xf32> to vector<32x16xbf16>
    %73 = arith.truncf %64 : vector<32x16xf32> to vector<32x16xbf16>
    %74 = arith.truncf %67 : vector<32x16xf32> to vector<32x16xbf16>
    %75 = arith.truncf %70 : vector<32x16xf32> to vector<32x16xbf16>
    %c0_42 = arith.constant 0 : index
    %c0_43 = arith.constant 0 : index
    %c0_44 = arith.constant 0 : index
    %76 = vector.load %arg9[%c0_42, %c0_43, %c0_44] : memref<5x16x32xbf16, #tpu.memory_space<vmem>>, vector<1x16x32xbf16>
    %77 = vector.shape_cast %76 : vector<1x16x32xbf16> to vector<16x32xbf16>
    %cst_45 = arith.constant dense<0.000000e+00> : vector<32x32xf32>
    %78 = tpu.matmul %71, %77, %cst_45 {dimension_numbers = #tpu.dot_dimension_numbers<[1], [0], [0], [1], [0, 0, 1, 1], [], []>} : vector<32x16xbf16>, vector<16x32xbf16>, vector<32x32xf32> -> vector<32x32xf32>
    %c1_46 = arith.constant 1 : index
    %c0_47 = arith.constant 0 : index
    %c0_48 = arith.constant 0 : index
    %79 = vector.load %arg9[%c1_46, %c0_47, %c0_48] : memref<5x16x32xbf16, #tpu.memory_space<vmem>>, vector<1x16x32xbf16>
    %80 = vector.shape_cast %79 : vector<1x16x32xbf16> to vector<16x32xbf16>
    %cst_49 = arith.constant dense<0.000000e+00> : vector<32x32xf32>
    %81 = tpu.matmul %72, %80, %cst_49 {dimension_numbers = #tpu.dot_dimension_numbers<[1], [0], [0], [1], [0, 0, 1, 1], [], []>} : vector<32x16xbf16>, vector<16x32xbf16>, vector<32x32xf32> -> vector<32x32xf32>
    %82 = arith.addf %78, %81 : vector<32x32xf32>
    %c2_50 = arith.constant 2 : index
    %c0_51 = arith.constant 0 : index
    %c0_52 = arith.constant 0 : index
    %83 = vector.load %arg9[%c2_50, %c0_51, %c0_52] : memref<5x16x32xbf16, #tpu.memory_space<vmem>>, vector<1x16x32xbf16>
    %84 = vector.shape_cast %83 : vector<1x16x32xbf16> to vector<16x32xbf16>
    %cst_53 = arith.constant dense<0.000000e+00> : vector<32x32xf32>
    %85 = tpu.matmul %73, %84, %cst_53 {dimension_numbers = #tpu.dot_dimension_numbers<[1], [0], [0], [1], [0, 0, 1, 1], [], []>} : vector<32x16xbf16>, vector<16x32xbf16>, vector<32x32xf32> -> vector<32x32xf32>
    %86 = arith.addf %82, %85 : vector<32x32xf32>
    %c3_54 = arith.constant 3 : index
    %c0_55 = arith.constant 0 : index
    %c0_56 = arith.constant 0 : index
    %87 = vector.load %arg9[%c3_54, %c0_55, %c0_56] : memref<5x16x32xbf16, #tpu.memory_space<vmem>>, vector<1x16x32xbf16>
    %88 = vector.shape_cast %87 : vector<1x16x32xbf16> to vector<16x32xbf16>
    %cst_57 = arith.constant dense<0.000000e+00> : vector<32x32xf32>
    %89 = tpu.matmul %74, %88, %cst_57 {dimension_numbers = #tpu.dot_dimension_numbers<[1], [0], [0], [1], [0, 0, 1, 1], [], []>} : vector<32x16xbf16>, vector<16x32xbf16>, vector<32x32xf32> -> vector<32x32xf32>
    %90 = arith.addf %86, %89 : vector<32x32xf32>
    %c4_58 = arith.constant 4 : index
    %c0_59 = arith.constant 0 : index
    %c0_60 = arith.constant 0 : index
    %91 = vector.load %arg9[%c4_58, %c0_59, %c0_60] : memref<5x16x32xbf16, #tpu.memory_space<vmem>>, vector<1x16x32xbf16>
    %92 = vector.shape_cast %91 : vector<1x16x32xbf16> to vector<16x32xbf16>
    %cst_61 = arith.constant dense<0.000000e+00> : vector<32x32xf32>
    %93 = tpu.matmul %75, %92, %cst_61 {dimension_numbers = #tpu.dot_dimension_numbers<[1], [0], [0], [1], [0, 0, 1, 1], [], []>} : vector<32x16xbf16>, vector<16x32xbf16>, vector<32x32xf32> -> vector<32x32xf32>
    %94 = arith.addf %90, %93 : vector<32x32xf32>
    %95 = vector.extract_strided_slice %94 {offsets = [0, 0], sizes = [32, 16], strides = [1, 1]} : vector<32x32xf32> to vector<32x16xf32>
    %96 = vector.extract_strided_slice %94 {offsets = [0, 16], sizes = [32, 16], strides = [1, 1]} : vector<32x32xf32> to vector<32x16xf32>
    %97 = arith.maximumf %61, %64 : vector<32x16xf32>
    %98 = arith.maximumf %97, %67 : vector<32x16xf32>
    %99 = arith.addf %61, %64 : vector<32x16xf32>
    %100 = arith.addf %99, %67 : vector<32x16xf32>
    %cst_62 = arith.constant 0.333333343 : f32
    %101 = vector.broadcast %cst_62 : f32 to vector<32x16xf32>
    %102 = arith.mulf %100, %101 : vector<32x16xf32>
    %c0_63 = arith.constant 0 : index
    %c0_64 = arith.constant 0 : index
    %103 = vector.load %arg10[%c0_63, %c0_64] : memref<5x16xf32, #tpu.memory_space<vmem>>, vector<5x16xf32>
    %104 = vector.extract_strided_slice %103 {offsets = [0, 0], sizes = [1, 16], strides = [1, 1]} : vector<5x16xf32> to vector<1x16xf32>
    %105 = vector.broadcast %104 : vector<1x16xf32> to vector<32x16xf32>
    %106 = arith.mulf %105, %64 : vector<32x16xf32>
    %107 = vector.extract_strided_slice %103 {offsets = [1, 0], sizes = [1, 16], strides = [1, 1]} : vector<5x16xf32> to vector<1x16xf32>
    %cst_65 = arith.constant dense<0.000000e+00> : vector<16xf32>
    %108 = vector.multi_reduction <add>, %95, %cst_65 [0] : vector<32x16xf32> to vector<16xf32>
    %109 = vector.shape_cast %108 : vector<16xf32> to vector<1x16xf32>
    %cst_66 = arith.constant 3.125000e-02 : f32
    %110 = vector.broadcast %cst_66 : f32 to vector<1x16xf32>
    %111 = arith.mulf %109, %110 : vector<1x16xf32>
    %112 = vector.broadcast %111 : vector<1x16xf32> to vector<32x16xf32>
    %113 = arith.subf %95, %112 : vector<32x16xf32>
    %114 = arith.mulf %113, %113 : vector<32x16xf32>
    %cst_67 = arith.constant dense<0.000000e+00> : vector<16xf32>
    %115 = vector.multi_reduction <add>, %114, %cst_67 [0] : vector<32x16xf32> to vector<16xf32>
    %116 = vector.shape_cast %115 : vector<16xf32> to vector<1x16xf32>
    %cst_68 = arith.constant 3.125000e-02 : f32
    %117 = vector.broadcast %cst_68 : f32 to vector<1x16xf32>
    %118 = arith.mulf %116, %117 : vector<1x16xf32>
    %cst_69 = arith.constant 9.99999974E-6 : f32
    %119 = vector.broadcast %cst_69 : f32 to vector<1x16xf32>
    %120 = arith.addf %118, %119 : vector<1x16xf32>
    %121 = math.rsqrt %120 : vector<1x16xf32>
    %122 = arith.mulf %107, %121 : vector<1x16xf32>
    %123 = vector.broadcast %122 : vector<1x16xf32> to vector<32x16xf32>
    %124 = arith.mulf %95, %123 : vector<32x16xf32>
    %125 = arith.mulf %111, %122 : vector<1x16xf32>
    %126 = vector.broadcast %125 : vector<1x16xf32> to vector<32x16xf32>
    %127 = arith.subf %124, %126 : vector<32x16xf32>
    %cst_70 = arith.constant 0.000000e+00 : f32
    %128 = vector.broadcast %cst_70 : f32 to vector<32x16xf32>
    %129 = arith.maximumf %127, %128 : vector<32x16xf32>
    %130 = arith.addf %106, %129 : vector<32x16xf32>
    %131 = vector.extract_strided_slice %103 {offsets = [2, 0], sizes = [1, 16], strides = [1, 1]} : vector<5x16xf32> to vector<1x16xf32>
    %cst_71 = arith.constant dense<0.000000e+00> : vector<16xf32>
    %132 = vector.multi_reduction <add>, %96, %cst_71 [0] : vector<32x16xf32> to vector<16xf32>
    %133 = vector.shape_cast %132 : vector<16xf32> to vector<1x16xf32>
    %cst_72 = arith.constant 3.125000e-02 : f32
    %134 = vector.broadcast %cst_72 : f32 to vector<1x16xf32>
    %135 = arith.mulf %133, %134 : vector<1x16xf32>
    %136 = vector.broadcast %135 : vector<1x16xf32> to vector<32x16xf32>
    %137 = arith.subf %96, %136 : vector<32x16xf32>
    %138 = arith.mulf %137, %137 : vector<32x16xf32>
    %cst_73 = arith.constant dense<0.000000e+00> : vector<16xf32>
    %139 = vector.multi_reduction <add>, %138, %cst_73 [0] : vector<32x16xf32> to vector<16xf32>
    %140 = vector.shape_cast %139 : vector<16xf32> to vector<1x16xf32>
    %cst_74 = arith.constant 3.125000e-02 : f32
    %141 = vector.broadcast %cst_74 : f32 to vector<1x16xf32>
    %142 = arith.mulf %140, %141 : vector<1x16xf32>
    %cst_75 = arith.constant 9.99999974E-6 : f32
    %143 = vector.broadcast %cst_75 : f32 to vector<1x16xf32>
    %144 = arith.addf %142, %143 : vector<1x16xf32>
    %145 = math.rsqrt %144 : vector<1x16xf32>
    %146 = arith.mulf %131, %145 : vector<1x16xf32>
    %147 = vector.broadcast %146 : vector<1x16xf32> to vector<32x16xf32>
    %148 = arith.mulf %96, %147 : vector<32x16xf32>
    %149 = arith.mulf %135, %146 : vector<1x16xf32>
    %150 = vector.broadcast %149 : vector<1x16xf32> to vector<32x16xf32>
    %151 = arith.subf %148, %150 : vector<32x16xf32>
    %cst_76 = arith.constant 0.000000e+00 : f32
    %152 = vector.broadcast %cst_76 : f32 to vector<32x16xf32>
    %153 = arith.maximumf %151, %152 : vector<32x16xf32>
    %154 = arith.addf %130, %153 : vector<32x16xf32>
    %155 = vector.extract_strided_slice %103 {offsets = [3, 0], sizes = [1, 16], strides = [1, 1]} : vector<5x16xf32> to vector<1x16xf32>
    %cst_77 = arith.constant dense<0.000000e+00> : vector<16xf32>
    %156 = vector.multi_reduction <add>, %98, %cst_77 [0] : vector<32x16xf32> to vector<16xf32>
    %157 = vector.shape_cast %156 : vector<16xf32> to vector<1x16xf32>
    %cst_78 = arith.constant 3.125000e-02 : f32
    %158 = vector.broadcast %cst_78 : f32 to vector<1x16xf32>
    %159 = arith.mulf %157, %158 : vector<1x16xf32>
    %160 = vector.broadcast %159 : vector<1x16xf32> to vector<32x16xf32>
    %161 = arith.subf %98, %160 : vector<32x16xf32>
    %162 = arith.mulf %161, %161 : vector<32x16xf32>
    %cst_79 = arith.constant dense<0.000000e+00> : vector<16xf32>
    %163 = vector.multi_reduction <add>, %162, %cst_79 [0] : vector<32x16xf32> to vector<16xf32>
    %164 = vector.shape_cast %163 : vector<16xf32> to vector<1x16xf32>
    %cst_80 = arith.constant 3.125000e-02 : f32
    %165 = vector.broadcast %cst_80 : f32 to vector<1x16xf32>
    %166 = arith.mulf %164, %165 : vector<1x16xf32>
    %cst_81 = arith.constant 9.99999974E-6 : f32
    %167 = vector.broadcast %cst_81 : f32 to vector<1x16xf32>
    %168 = arith.addf %166, %167 : vector<1x16xf32>
    %169 = math.rsqrt %168 : vector<1x16xf32>
    %170 = arith.mulf %155, %169 : vector<1x16xf32>
    %171 = vector.broadcast %170 : vector<1x16xf32> to vector<32x16xf32>
    %172 = arith.mulf %98, %171 : vector<32x16xf32>
    %173 = arith.mulf %159, %170 : vector<1x16xf32>
    %174 = vector.broadcast %173 : vector<1x16xf32> to vector<32x16xf32>
    %175 = arith.subf %172, %174 : vector<32x16xf32>
    %176 = arith.addf %154, %175 : vector<32x16xf32>
    %177 = vector.extract_strided_slice %103 {offsets = [4, 0], sizes = [1, 16], strides = [1, 1]} : vector<5x16xf32> to vector<1x16xf32>
    %cst_82 = arith.constant dense<0.000000e+00> : vector<16xf32>
    %178 = vector.multi_reduction <add>, %102, %cst_82 [0] : vector<32x16xf32> to vector<16xf32>
    %179 = vector.shape_cast %178 : vector<16xf32> to vector<1x16xf32>
    %cst_83 = arith.constant 3.125000e-02 : f32
    %180 = vector.broadcast %cst_83 : f32 to vector<1x16xf32>
    %181 = arith.mulf %179, %180 : vector<1x16xf32>
    %182 = vector.broadcast %181 : vector<1x16xf32> to vector<32x16xf32>
    %183 = arith.subf %102, %182 : vector<32x16xf32>
    %184 = arith.mulf %183, %183 : vector<32x16xf32>
    %cst_84 = arith.constant dense<0.000000e+00> : vector<16xf32>
    %185 = vector.multi_reduction <add>, %184, %cst_84 [0] : vector<32x16xf32> to vector<16xf32>
    %186 = vector.shape_cast %185 : vector<16xf32> to vector<1x16xf32>
    %cst_85 = arith.constant 3.125000e-02 : f32
    %187 = vector.broadcast %cst_85 : f32 to vector<1x16xf32>
    %188 = arith.mulf %186, %187 : vector<1x16xf32>
    %cst_86 = arith.constant 9.99999974E-6 : f32
    %189 = vector.broadcast %cst_86 : f32 to vector<1x16xf32>
    %190 = arith.addf %188, %189 : vector<1x16xf32>
    %191 = math.rsqrt %190 : vector<1x16xf32>
    %192 = arith.mulf %177, %191 : vector<1x16xf32>
    %193 = vector.broadcast %192 : vector<1x16xf32> to vector<32x16xf32>
    %194 = arith.mulf %102, %193 : vector<32x16xf32>
    %195 = arith.mulf %181, %192 : vector<1x16xf32>
    %196 = vector.broadcast %195 : vector<1x16xf32> to vector<32x16xf32>
    %197 = arith.subf %194, %196 : vector<32x16xf32>
    %198 = arith.addf %176, %197 : vector<32x16xf32>
    %199 = arith.truncf %198 : vector<32x16xf32> to vector<32x16xbf16>
    %c0_87 = arith.constant 0 : index
    %c0_88 = arith.constant 0 : index
    %200 = vector.load %arg11[%c0_87, %c0_88] : memref<16x16xbf16, #tpu.memory_space<vmem>>, vector<16x16xbf16>
    %cst_89 = arith.constant dense<0.000000e+00> : vector<32x16xf32>
    %201 = tpu.matmul %199, %200, %cst_89 {dimension_numbers = #tpu.dot_dimension_numbers<[1], [0], [0], [1], [0, 0, 1, 1], [], []>} : vector<32x16xbf16>, vector<16x16xbf16>, vector<32x16xf32> -> vector<32x16xf32>
    %cst_90 = arith.constant dense<0.000000e+00> : vector<16xf32>
    %202 = vector.multi_reduction <add>, %201, %cst_90 [0] : vector<32x16xf32> to vector<16xf32>
    %203 = vector.shape_cast %202 : vector<16xf32> to vector<1x16xf32>
    %cst_91 = arith.constant 3.125000e-02 : f32
    %204 = vector.broadcast %cst_91 : f32 to vector<1x16xf32>
    %205 = arith.mulf %203, %204 : vector<1x16xf32>
    %206 = vector.broadcast %205 : vector<1x16xf32> to vector<32x16xf32>
    %207 = arith.subf %201, %206 : vector<32x16xf32>
    %208 = arith.mulf %207, %207 : vector<32x16xf32>
    %cst_92 = arith.constant dense<0.000000e+00> : vector<16xf32>
    %209 = vector.multi_reduction <add>, %208, %cst_92 [0] : vector<32x16xf32> to vector<16xf32>
    %210 = vector.shape_cast %209 : vector<16xf32> to vector<1x16xf32>
    %cst_93 = arith.constant 3.125000e-02 : f32
    %211 = vector.broadcast %cst_93 : f32 to vector<1x16xf32>
    %212 = arith.mulf %210, %211 : vector<1x16xf32>
    %cst_94 = arith.constant 9.99999974E-6 : f32
    %213 = vector.broadcast %cst_94 : f32 to vector<1x16xf32>
    %214 = arith.addf %212, %213 : vector<1x16xf32>
    %215 = math.rsqrt %214 : vector<1x16xf32>
    %c0_95 = arith.constant 0 : index
    %c0_96 = arith.constant 0 : index
    %216 = vector.load %arg12[%c0_95, %c0_96] : memref<1x16xf32, #tpu.memory_space<vmem>>, vector<1x16xf32>
    %217 = arith.mulf %216, %215 : vector<1x16xf32>
    %c0_97 = arith.constant 0 : index
    %c0_98 = arith.constant 0 : index
    %218 = vector.load %arg13[%c0_97, %c0_98] : memref<1x16xf32, #tpu.memory_space<vmem>>, vector<1x16xf32>
    %219 = arith.mulf %205, %217 : vector<1x16xf32>
    %220 = arith.subf %218, %219 : vector<1x16xf32>
    %221 = vector.broadcast %217 : vector<1x16xf32> to vector<32x16xf32>
    %222 = arith.mulf %201, %221 : vector<32x16xf32>
    %223 = vector.broadcast %220 : vector<1x16xf32> to vector<32x16xf32>
    %224 = arith.addf %222, %223 : vector<32x16xf32>
    %cst_99 = arith.constant 0.000000e+00 : f32
    %225 = vector.broadcast %cst_99 : f32 to vector<32x16xf32>
    %226 = arith.maximumf %224, %225 : vector<32x16xf32>
    %227 = arith.truncf %226 : vector<32x16xf32> to vector<32x16xbf16>
    %c0_100 = arith.constant 0 : index
    %c0_101 = arith.constant 0 : index
    %228 = vector.load %arg14[%c0_100, %c0_101] : memref<16x32xbf16, #tpu.memory_space<vmem>>, vector<16x32xbf16>
    %cst_102 = arith.constant dense<0.000000e+00> : vector<32x32xf32>
    %229 = tpu.matmul %227, %228, %cst_102 {dimension_numbers = #tpu.dot_dimension_numbers<[1], [0], [0], [1], [0, 0, 1, 1], [], []>} : vector<32x16xbf16>, vector<16x32xbf16>, vector<32x32xf32> -> vector<32x32xf32>
    %cst_103 = arith.constant dense<0.000000e+00> : vector<32xf32>
    %230 = vector.multi_reduction <add>, %229, %cst_103 [0] : vector<32x32xf32> to vector<32xf32>
    %231 = vector.shape_cast %230 : vector<32xf32> to vector<1x32xf32>
    %cst_104 = arith.constant 3.125000e-02 : f32
    %232 = vector.broadcast %cst_104 : f32 to vector<1x32xf32>
    %233 = arith.mulf %231, %232 : vector<1x32xf32>
    %234 = vector.broadcast %233 : vector<1x32xf32> to vector<32x32xf32>
    %235 = arith.subf %229, %234 : vector<32x32xf32>
    %236 = arith.mulf %235, %235 : vector<32x32xf32>
    %cst_105 = arith.constant dense<0.000000e+00> : vector<32xf32>
    %237 = vector.multi_reduction <add>, %236, %cst_105 [0] : vector<32x32xf32> to vector<32xf32>
    %238 = vector.shape_cast %237 : vector<32xf32> to vector<1x32xf32>
    %cst_106 = arith.constant 3.125000e-02 : f32
    %239 = vector.broadcast %cst_106 : f32 to vector<1x32xf32>
    %240 = arith.mulf %238, %239 : vector<1x32xf32>
    %cst_107 = arith.constant 9.99999974E-6 : f32
    %241 = vector.broadcast %cst_107 : f32 to vector<1x32xf32>
    %242 = arith.addf %240, %241 : vector<1x32xf32>
    %243 = math.rsqrt %242 : vector<1x32xf32>
    %c0_108 = arith.constant 0 : index
    %c0_109 = arith.constant 0 : index
    %244 = vector.load %arg15[%c0_108, %c0_109] : memref<1x32xf32, #tpu.memory_space<vmem>>, vector<1x32xf32>
    %245 = arith.mulf %244, %243 : vector<1x32xf32>
    %c0_110 = arith.constant 0 : index
    %c0_111 = arith.constant 0 : index
    %246 = vector.load %arg16[%c0_110, %c0_111] : memref<1x32xf32, #tpu.memory_space<vmem>>, vector<1x32xf32>
    %247 = arith.mulf %233, %245 : vector<1x32xf32>
    %248 = arith.subf %246, %247 : vector<1x32xf32>
    %249 = vector.broadcast %245 : vector<1x32xf32> to vector<32x32xf32>
    %250 = arith.mulf %229, %249 : vector<32x32xf32>
    %251 = vector.broadcast %248 : vector<1x32xf32> to vector<32x32xf32>
    %252 = arith.addf %250, %251 : vector<32x32xf32>
    %cst_112 = arith.constant 0.000000e+00 : f32
    %253 = vector.broadcast %cst_112 : f32 to vector<32x32xf32>
    %254 = arith.maximumf %252, %253 : vector<32x32xf32>
    %c0_113 = arith.constant 0 : index
    %c0_114 = arith.constant 0 : index
    %c0_115 = arith.constant 0 : index
    %255 = vector.load %arg17[%c0_113, %c0_114, %c0_115] : memref<5x16x32xf32, #tpu.memory_space<vmem>>, vector<1x16x32xf32>
    %256 = vector.shape_cast %255 : vector<1x16x32xf32> to vector<16x32xf32>
    %cst_116 = arith.constant dense<0.000000e+00> : vector<16x32xf32>
    %257 = tpu.matmul %256, %254, %cst_116 {dimension_numbers = #tpu.dot_dimension_numbers<[1], [0], [0], [1], [0, 0, 1, 1], [], []>} : vector<16x32xf32>, vector<32x32xf32>, vector<16x32xf32> -> vector<16x32xf32>
    %c1_117 = arith.constant 1 : index
    %c0_118 = arith.constant 0 : index
    %c0_119 = arith.constant 0 : index
    %258 = vector.load %arg17[%c1_117, %c0_118, %c0_119] : memref<5x16x32xf32, #tpu.memory_space<vmem>>, vector<1x16x32xf32>
    %259 = vector.shape_cast %258 : vector<1x16x32xf32> to vector<16x32xf32>
    %cst_120 = arith.constant dense<0.000000e+00> : vector<16x32xf32>
    %260 = tpu.matmul %259, %254, %cst_120 {dimension_numbers = #tpu.dot_dimension_numbers<[1], [0], [0], [1], [0, 0, 1, 1], [], []>} : vector<16x32xf32>, vector<32x32xf32>, vector<16x32xf32> -> vector<16x32xf32>
    %c2_121 = arith.constant 2 : index
    %c0_122 = arith.constant 0 : index
    %c0_123 = arith.constant 0 : index
    %261 = vector.load %arg17[%c2_121, %c0_122, %c0_123] : memref<5x16x32xf32, #tpu.memory_space<vmem>>, vector<1x16x32xf32>
    %262 = vector.shape_cast %261 : vector<1x16x32xf32> to vector<16x32xf32>
    %cst_124 = arith.constant dense<0.000000e+00> : vector<16x32xf32>
    %263 = tpu.matmul %262, %254, %cst_124 {dimension_numbers = #tpu.dot_dimension_numbers<[1], [0], [0], [1], [0, 0, 1, 1], [], []>} : vector<16x32xf32>, vector<32x32xf32>, vector<16x32xf32> -> vector<16x32xf32>
    %c3_125 = arith.constant 3 : index
    %c0_126 = arith.constant 0 : index
    %c0_127 = arith.constant 0 : index
    %264 = vector.load %arg17[%c3_125, %c0_126, %c0_127] : memref<5x16x32xf32, #tpu.memory_space<vmem>>, vector<1x16x32xf32>
    %265 = vector.shape_cast %264 : vector<1x16x32xf32> to vector<16x32xf32>
    %cst_128 = arith.constant dense<0.000000e+00> : vector<16x32xf32>
    %266 = tpu.matmul %265, %254, %cst_128 {dimension_numbers = #tpu.dot_dimension_numbers<[1], [0], [0], [1], [0, 0, 1, 1], [], []>} : vector<16x32xf32>, vector<32x32xf32>, vector<16x32xf32> -> vector<16x32xf32>
    %c4_129 = arith.constant 4 : index
    %c0_130 = arith.constant 0 : index
    %c0_131 = arith.constant 0 : index
    %267 = vector.load %arg17[%c4_129, %c0_130, %c0_131] : memref<5x16x32xf32, #tpu.memory_space<vmem>>, vector<1x16x32xf32>
    %268 = vector.shape_cast %267 : vector<1x16x32xf32> to vector<16x32xf32>
    %cst_132 = arith.constant dense<0.000000e+00> : vector<16x32xf32>
    %269 = tpu.matmul %268, %254, %cst_132 {dimension_numbers = #tpu.dot_dimension_numbers<[1], [0], [0], [1], [0, 0, 1, 1], [], []>} : vector<16x32xf32>, vector<32x32xf32>, vector<16x32xf32> -> vector<16x32xf32>
    %270 = arith.truncf %257 : vector<16x32xf32> to vector<16x32xbf16>
    %271 = arith.truncf %260 : vector<16x32xf32> to vector<16x32xbf16>
    %272 = arith.truncf %263 : vector<16x32xf32> to vector<16x32xbf16>
    %273 = arith.truncf %266 : vector<16x32xf32> to vector<16x32xbf16>
    %274 = arith.truncf %269 : vector<16x32xf32> to vector<16x32xbf16>
    %c0_133 = arith.constant 0 : index
    %c0_134 = arith.constant 0 : index
    %c0_135 = arith.constant 0 : index
    %275 = vector.load %arg18[%c0_133, %c0_134, %c0_135] : memref<5x32x64xbf16, #tpu.memory_space<vmem>>, vector<1x32x64xbf16>
    %276 = vector.shape_cast %275 : vector<1x32x64xbf16> to vector<32x64xbf16>
    %cst_136 = arith.constant dense<0.000000e+00> : vector<16x64xf32>
    %277 = tpu.matmul %270, %276, %cst_136 {dimension_numbers = #tpu.dot_dimension_numbers<[1], [0], [0], [1], [0, 0, 1, 1], [], []>} : vector<16x32xbf16>, vector<32x64xbf16>, vector<16x64xf32> -> vector<16x64xf32>
    %c1_137 = arith.constant 1 : index
    %c0_138 = arith.constant 0 : index
    %c0_139 = arith.constant 0 : index
    %278 = vector.load %arg18[%c1_137, %c0_138, %c0_139] : memref<5x32x64xbf16, #tpu.memory_space<vmem>>, vector<1x32x64xbf16>
    %279 = vector.shape_cast %278 : vector<1x32x64xbf16> to vector<32x64xbf16>
    %cst_140 = arith.constant dense<0.000000e+00> : vector<16x64xf32>
    %280 = tpu.matmul %271, %279, %cst_140 {dimension_numbers = #tpu.dot_dimension_numbers<[1], [0], [0], [1], [0, 0, 1, 1], [], []>} : vector<16x32xbf16>, vector<32x64xbf16>, vector<16x64xf32> -> vector<16x64xf32>
    %281 = arith.addf %277, %280 : vector<16x64xf32>
    %c2_141 = arith.constant 2 : index
    %c0_142 = arith.constant 0 : index
    %c0_143 = arith.constant 0 : index
    %282 = vector.load %arg18[%c2_141, %c0_142, %c0_143] : memref<5x32x64xbf16, #tpu.memory_space<vmem>>, vector<1x32x64xbf16>
    %283 = vector.shape_cast %282 : vector<1x32x64xbf16> to vector<32x64xbf16>
    %cst_144 = arith.constant dense<0.000000e+00> : vector<16x64xf32>
    %284 = tpu.matmul %272, %283, %cst_144 {dimension_numbers = #tpu.dot_dimension_numbers<[1], [0], [0], [1], [0, 0, 1, 1], [], []>} : vector<16x32xbf16>, vector<32x64xbf16>, vector<16x64xf32> -> vector<16x64xf32>
    %285 = arith.addf %281, %284 : vector<16x64xf32>
    %c3_145 = arith.constant 3 : index
    %c0_146 = arith.constant 0 : index
    %c0_147 = arith.constant 0 : index
    %286 = vector.load %arg18[%c3_145, %c0_146, %c0_147] : memref<5x32x64xbf16, #tpu.memory_space<vmem>>, vector<1x32x64xbf16>
    %287 = vector.shape_cast %286 : vector<1x32x64xbf16> to vector<32x64xbf16>
    %cst_148 = arith.constant dense<0.000000e+00> : vector<16x64xf32>
    %288 = tpu.matmul %273, %287, %cst_148 {dimension_numbers = #tpu.dot_dimension_numbers<[1], [0], [0], [1], [0, 0, 1, 1], [], []>} : vector<16x32xbf16>, vector<32x64xbf16>, vector<16x64xf32> -> vector<16x64xf32>
    %289 = arith.addf %285, %288 : vector<16x64xf32>
    %c4_149 = arith.constant 4 : index
    %c0_150 = arith.constant 0 : index
    %c0_151 = arith.constant 0 : index
    %290 = vector.load %arg18[%c4_149, %c0_150, %c0_151] : memref<5x32x64xbf16, #tpu.memory_space<vmem>>, vector<1x32x64xbf16>
    %291 = vector.shape_cast %290 : vector<1x32x64xbf16> to vector<32x64xbf16>
    %cst_152 = arith.constant dense<0.000000e+00> : vector<16x64xf32>
    %292 = tpu.matmul %274, %291, %cst_152 {dimension_numbers = #tpu.dot_dimension_numbers<[1], [0], [0], [1], [0, 0, 1, 1], [], []>} : vector<16x32xbf16>, vector<32x64xbf16>, vector<16x64xf32> -> vector<16x64xf32>
    %293 = arith.addf %289, %292 : vector<16x64xf32>
    %294 = vector.extract_strided_slice %293 {offsets = [0, 0], sizes = [16, 32], strides = [1, 1]} : vector<16x64xf32> to vector<16x32xf32>
    %295 = vector.extract_strided_slice %293 {offsets = [0, 32], sizes = [16, 32], strides = [1, 1]} : vector<16x64xf32> to vector<16x32xf32>
    %296 = arith.maximumf %260, %263 : vector<16x32xf32>
    %297 = arith.maximumf %296, %266 : vector<16x32xf32>
    %298 = arith.addf %260, %263 : vector<16x32xf32>
    %299 = arith.addf %298, %266 : vector<16x32xf32>
    %cst_153 = arith.constant 0.333333343 : f32
    %300 = vector.broadcast %cst_153 : f32 to vector<16x32xf32>
    %301 = arith.mulf %299, %300 : vector<16x32xf32>
    %c0_154 = arith.constant 0 : index
    %c0_155 = arith.constant 0 : index
    %302 = vector.load %arg19[%c0_154, %c0_155] : memref<5x32xf32, #tpu.memory_space<vmem>>, vector<5x32xf32>
    %303 = vector.extract_strided_slice %302 {offsets = [0, 0], sizes = [1, 32], strides = [1, 1]} : vector<5x32xf32> to vector<1x32xf32>
    %304 = vector.broadcast %303 : vector<1x32xf32> to vector<16x32xf32>
    %305 = arith.mulf %304, %263 : vector<16x32xf32>
    %306 = vector.extract_strided_slice %302 {offsets = [1, 0], sizes = [1, 32], strides = [1, 1]} : vector<5x32xf32> to vector<1x32xf32>
    %cst_156 = arith.constant dense<0.000000e+00> : vector<32xf32>
    %307 = vector.multi_reduction <add>, %294, %cst_156 [0] : vector<16x32xf32> to vector<32xf32>
    %308 = vector.shape_cast %307 : vector<32xf32> to vector<1x32xf32>
    %cst_157 = arith.constant 6.250000e-02 : f32
    %309 = vector.broadcast %cst_157 : f32 to vector<1x32xf32>
    %310 = arith.mulf %308, %309 : vector<1x32xf32>
    %311 = vector.broadcast %310 : vector<1x32xf32> to vector<16x32xf32>
    %312 = arith.subf %294, %311 : vector<16x32xf32>
    %313 = arith.mulf %312, %312 : vector<16x32xf32>
    %cst_158 = arith.constant dense<0.000000e+00> : vector<32xf32>
    %314 = vector.multi_reduction <add>, %313, %cst_158 [0] : vector<16x32xf32> to vector<32xf32>
    %315 = vector.shape_cast %314 : vector<32xf32> to vector<1x32xf32>
    %cst_159 = arith.constant 6.250000e-02 : f32
    %316 = vector.broadcast %cst_159 : f32 to vector<1x32xf32>
    %317 = arith.mulf %315, %316 : vector<1x32xf32>
    %cst_160 = arith.constant 9.99999974E-6 : f32
    %318 = vector.broadcast %cst_160 : f32 to vector<1x32xf32>
    %319 = arith.addf %317, %318 : vector<1x32xf32>
    %320 = math.rsqrt %319 : vector<1x32xf32>
    %321 = arith.mulf %306, %320 : vector<1x32xf32>
    %322 = vector.broadcast %321 : vector<1x32xf32> to vector<16x32xf32>
    %323 = arith.mulf %294, %322 : vector<16x32xf32>
    %324 = arith.mulf %310, %321 : vector<1x32xf32>
    %325 = vector.broadcast %324 : vector<1x32xf32> to vector<16x32xf32>
    %326 = arith.subf %323, %325 : vector<16x32xf32>
    %cst_161 = arith.constant 0.000000e+00 : f32
    %327 = vector.broadcast %cst_161 : f32 to vector<16x32xf32>
    %328 = arith.maximumf %326, %327 : vector<16x32xf32>
    %329 = arith.addf %305, %328 : vector<16x32xf32>
    %330 = vector.extract_strided_slice %302 {offsets = [2, 0], sizes = [1, 32], strides = [1, 1]} : vector<5x32xf32> to vector<1x32xf32>
    %cst_162 = arith.constant dense<0.000000e+00> : vector<32xf32>
    %331 = vector.multi_reduction <add>, %295, %cst_162 [0] : vector<16x32xf32> to vector<32xf32>
    %332 = vector.shape_cast %331 : vector<32xf32> to vector<1x32xf32>
    %cst_163 = arith.constant 6.250000e-02 : f32
    %333 = vector.broadcast %cst_163 : f32 to vector<1x32xf32>
    %334 = arith.mulf %332, %333 : vector<1x32xf32>
    %335 = vector.broadcast %334 : vector<1x32xf32> to vector<16x32xf32>
    %336 = arith.subf %295, %335 : vector<16x32xf32>
    %337 = arith.mulf %336, %336 : vector<16x32xf32>
    %cst_164 = arith.constant dense<0.000000e+00> : vector<32xf32>
    %338 = vector.multi_reduction <add>, %337, %cst_164 [0] : vector<16x32xf32> to vector<32xf32>
    %339 = vector.shape_cast %338 : vector<32xf32> to vector<1x32xf32>
    %cst_165 = arith.constant 6.250000e-02 : f32
    %340 = vector.broadcast %cst_165 : f32 to vector<1x32xf32>
    %341 = arith.mulf %339, %340 : vector<1x32xf32>
    %cst_166 = arith.constant 9.99999974E-6 : f32
    %342 = vector.broadcast %cst_166 : f32 to vector<1x32xf32>
    %343 = arith.addf %341, %342 : vector<1x32xf32>
    %344 = math.rsqrt %343 : vector<1x32xf32>
    %345 = arith.mulf %330, %344 : vector<1x32xf32>
    %346 = vector.broadcast %345 : vector<1x32xf32> to vector<16x32xf32>
    %347 = arith.mulf %295, %346 : vector<16x32xf32>
    %348 = arith.mulf %334, %345 : vector<1x32xf32>
    %349 = vector.broadcast %348 : vector<1x32xf32> to vector<16x32xf32>
    %350 = arith.subf %347, %349 : vector<16x32xf32>
    %cst_167 = arith.constant 0.000000e+00 : f32
    %351 = vector.broadcast %cst_167 : f32 to vector<16x32xf32>
    %352 = arith.maximumf %350, %351 : vector<16x32xf32>
    %353 = arith.addf %329, %352 : vector<16x32xf32>
    %354 = vector.extract_strided_slice %302 {offsets = [3, 0], sizes = [1, 32], strides = [1, 1]} : vector<5x32xf32> to vector<1x32xf32>
    %cst_168 = arith.constant dense<0.000000e+00> : vector<32xf32>
    %355 = vector.multi_reduction <add>, %297, %cst_168 [0] : vector<16x32xf32> to vector<32xf32>
    %356 = vector.shape_cast %355 : vector<32xf32> to vector<1x32xf32>
    %cst_169 = arith.constant 6.250000e-02 : f32
    %357 = vector.broadcast %cst_169 : f32 to vector<1x32xf32>
    %358 = arith.mulf %356, %357 : vector<1x32xf32>
    %359 = vector.broadcast %358 : vector<1x32xf32> to vector<16x32xf32>
    %360 = arith.subf %297, %359 : vector<16x32xf32>
    %361 = arith.mulf %360, %360 : vector<16x32xf32>
    %cst_170 = arith.constant dense<0.000000e+00> : vector<32xf32>
    %362 = vector.multi_reduction <add>, %361, %cst_170 [0] : vector<16x32xf32> to vector<32xf32>
    %363 = vector.shape_cast %362 : vector<32xf32> to vector<1x32xf32>
    %cst_171 = arith.constant 6.250000e-02 : f32
    %364 = vector.broadcast %cst_171 : f32 to vector<1x32xf32>
    %365 = arith.mulf %363, %364 : vector<1x32xf32>
    %cst_172 = arith.constant 9.99999974E-6 : f32
    %366 = vector.broadcast %cst_172 : f32 to vector<1x32xf32>
    %367 = arith.addf %365, %366 : vector<1x32xf32>
    %368 = math.rsqrt %367 : vector<1x32xf32>
    %369 = arith.mulf %354, %368 : vector<1x32xf32>
    %370 = vector.broadcast %369 : vector<1x32xf32> to vector<16x32xf32>
    %371 = arith.mulf %297, %370 : vector<16x32xf32>
    %372 = arith.mulf %358, %369 : vector<1x32xf32>
    %373 = vector.broadcast %372 : vector<1x32xf32> to vector<16x32xf32>
    %374 = arith.subf %371, %373 : vector<16x32xf32>
    %375 = arith.addf %353, %374 : vector<16x32xf32>
    %376 = vector.extract_strided_slice %302 {offsets = [4, 0], sizes = [1, 32], strides = [1, 1]} : vector<5x32xf32> to vector<1x32xf32>
    %cst_173 = arith.constant dense<0.000000e+00> : vector<32xf32>
    %377 = vector.multi_reduction <add>, %301, %cst_173 [0] : vector<16x32xf32> to vector<32xf32>
    %378 = vector.shape_cast %377 : vector<32xf32> to vector<1x32xf32>
    %cst_174 = arith.constant 6.250000e-02 : f32
    %379 = vector.broadcast %cst_174 : f32 to vector<1x32xf32>
    %380 = arith.mulf %378, %379 : vector<1x32xf32>
    %381 = vector.broadcast %380 : vector<1x32xf32> to vector<16x32xf32>
    %382 = arith.subf %301, %381 : vector<16x32xf32>
    %383 = arith.mulf %382, %382 : vector<16x32xf32>
    %cst_175 = arith.constant dense<0.000000e+00> : vector<32xf32>
    %384 = vector.multi_reduction <add>, %383, %cst_175 [0] : vector<16x32xf32> to vector<32xf32>
    %385 = vector.shape_cast %384 : vector<32xf32> to vector<1x32xf32>
    %cst_176 = arith.constant 6.250000e-02 : f32
    %386 = vector.broadcast %cst_176 : f32 to vector<1x32xf32>
    %387 = arith.mulf %385, %386 : vector<1x32xf32>
    %cst_177 = arith.constant 9.99999974E-6 : f32
    %388 = vector.broadcast %cst_177 : f32 to vector<1x32xf32>
    %389 = arith.addf %387, %388 : vector<1x32xf32>
    %390 = math.rsqrt %389 : vector<1x32xf32>
    %391 = arith.mulf %376, %390 : vector<1x32xf32>
    %392 = vector.broadcast %391 : vector<1x32xf32> to vector<16x32xf32>
    %393 = arith.mulf %301, %392 : vector<16x32xf32>
    %394 = arith.mulf %380, %391 : vector<1x32xf32>
    %395 = vector.broadcast %394 : vector<1x32xf32> to vector<16x32xf32>
    %396 = arith.subf %393, %395 : vector<16x32xf32>
    %397 = arith.addf %375, %396 : vector<16x32xf32>
    %398 = arith.truncf %397 : vector<16x32xf32> to vector<16x32xbf16>
    %c0_178 = arith.constant 0 : index
    %c0_179 = arith.constant 0 : index
    %399 = vector.load %arg20[%c0_178, %c0_179] : memref<32x32xbf16, #tpu.memory_space<vmem>>, vector<32x32xbf16>
    %cst_180 = arith.constant dense<0.000000e+00> : vector<16x32xf32>
    %400 = tpu.matmul %398, %399, %cst_180 {dimension_numbers = #tpu.dot_dimension_numbers<[1], [0], [0], [1], [0, 0, 1, 1], [], []>} : vector<16x32xbf16>, vector<32x32xbf16>, vector<16x32xf32> -> vector<16x32xf32>
    %cst_181 = arith.constant dense<0.000000e+00> : vector<32xf32>
    %401 = vector.multi_reduction <add>, %400, %cst_181 [0] : vector<16x32xf32> to vector<32xf32>
    %402 = vector.shape_cast %401 : vector<32xf32> to vector<1x32xf32>
    %cst_182 = arith.constant 6.250000e-02 : f32
    %403 = vector.broadcast %cst_182 : f32 to vector<1x32xf32>
    %404 = arith.mulf %402, %403 : vector<1x32xf32>
    %405 = vector.broadcast %404 : vector<1x32xf32> to vector<16x32xf32>
    %406 = arith.subf %400, %405 : vector<16x32xf32>
    %407 = arith.mulf %406, %406 : vector<16x32xf32>
    %cst_183 = arith.constant dense<0.000000e+00> : vector<32xf32>
    %408 = vector.multi_reduction <add>, %407, %cst_183 [0] : vector<16x32xf32> to vector<32xf32>
    %409 = vector.shape_cast %408 : vector<32xf32> to vector<1x32xf32>
    %cst_184 = arith.constant 6.250000e-02 : f32
    %410 = vector.broadcast %cst_184 : f32 to vector<1x32xf32>
    %411 = arith.mulf %409, %410 : vector<1x32xf32>
    %cst_185 = arith.constant 9.99999974E-6 : f32
    %412 = vector.broadcast %cst_185 : f32 to vector<1x32xf32>
    %413 = arith.addf %411, %412 : vector<1x32xf32>
    %414 = math.rsqrt %413 : vector<1x32xf32>
    %c0_186 = arith.constant 0 : index
    %c0_187 = arith.constant 0 : index
    %415 = vector.load %arg21[%c0_186, %c0_187] : memref<1x32xf32, #tpu.memory_space<vmem>>, vector<1x32xf32>
    %416 = arith.mulf %415, %414 : vector<1x32xf32>
    %c0_188 = arith.constant 0 : index
    %c0_189 = arith.constant 0 : index
    %417 = vector.load %arg22[%c0_188, %c0_189] : memref<1x32xf32, #tpu.memory_space<vmem>>, vector<1x32xf32>
    %418 = arith.mulf %404, %416 : vector<1x32xf32>
    %419 = arith.subf %417, %418 : vector<1x32xf32>
    %420 = vector.broadcast %416 : vector<1x32xf32> to vector<16x32xf32>
    %421 = arith.mulf %400, %420 : vector<16x32xf32>
    %422 = vector.broadcast %419 : vector<1x32xf32> to vector<16x32xf32>
    %423 = arith.addf %421, %422 : vector<16x32xf32>
    %cst_190 = arith.constant 0.000000e+00 : f32
    %424 = vector.broadcast %cst_190 : f32 to vector<16x32xf32>
    %425 = arith.maximumf %423, %424 : vector<16x32xf32>
    %c0_191 = arith.constant 0 : index
    %c0_192 = arith.constant 0 : index
    %426 = vector.load %arg23[%c0_191, %c0_192] : memref<2x16xf32, #tpu.memory_space<vmem>>, vector<2x16xf32>
    %cst_193 = arith.constant dense<0.000000e+00> : vector<2x32xf32>
    %427 = tpu.matmul %426, %425, %cst_193 {dimension_numbers = #tpu.dot_dimension_numbers<[1], [0], [0], [1], [0, 0, 1, 1], [], []>} : vector<2x16xf32>, vector<16x32xf32>, vector<2x32xf32> -> vector<2x32xf32>
    %c0_194 = arith.constant 0 : index
    %c0_195 = arith.constant 0 : index
    %428 = vector.load %arg24[%c0_194, %c0_195] : memref<1x32xf32, #tpu.memory_space<vmem>>, vector<1x32xf32>
    %cst_196 = arith.constant 0.000000e+00 : f32
    %429 = vector.broadcast %cst_196 : f32 to vector<1x32xf32>
    %430 = arith.subf %429, %428 : vector<1x32xf32>
    %431 = math.exp %430 : vector<1x32xf32>
    %cst_197 = arith.constant 1.000000e+00 : f32
    %432 = vector.broadcast %cst_197 : f32 to vector<1x32xf32>
    %433 = arith.addf %432, %431 : vector<1x32xf32>
    %cst_198 = arith.constant 1.000000e+00 : f32
    %434 = vector.broadcast %cst_198 : f32 to vector<1x32xf32>
    %435 = arith.divf %434, %433 : vector<1x32xf32>
    %436 = vector.broadcast %435 : vector<1x32xf32> to vector<2x32xf32>
    %437 = arith.mulf %427, %436 : vector<2x32xf32>
    %c0_199 = arith.constant 0 : index
    %c0_200 = arith.constant 0 : index
    %438 = vector.load %arg28[%c0_199, %c0_200] : memref<2x32xf32, #tpu.memory_space<vmem>>, vector<2x32xf32>
    tpu.vector_store %arg28[%c0_199, %c0_200], %437 {strides = array<i32>} : memref<2x32xf32, #tpu.memory_space<vmem>>, vector<2x32xf32>,
    %c0_201 = arith.constant 0 : index
    %c0_202 = arith.constant 0 : index
    %439 = vector.load %arg25[%c0_201, %c0_202] : memref<32x4xf32, #tpu.memory_space<vmem>>, vector<32x4xf32>
    %cst_203 = arith.constant dense<0.000000e+00> : vector<2x4xf32>
    %440 = tpu.matmul %437, %439, %cst_203 {dimension_numbers = #tpu.dot_dimension_numbers<[1], [0], [0], [1], [0, 0, 1, 1], [], []>} : vector<2x32xf32>, vector<32x4xf32>, vector<2x4xf32> -> vector<2x4xf32>
    %c0_204 = arith.constant 0 : index
    %c0_205 = arith.constant 0 : index
    %441 = vector.load %arg26[%c0_204, %c0_205] : memref<1x4xf32, #tpu.memory_space<vmem>>, vector<1x4xf32>
    %442 = vector.broadcast %441 : vector<1x4xf32> to vector<2x4xf32>
    %443 = arith.addf %440, %442 : vector<2x4xf32>
    %c0_206 = arith.constant 0 : index
    %c0_207 = arith.constant 0 : index
    %444 = vector.load %arg27[%c0_206, %c0_207] : memref<2x4xf32, #tpu.memory_space<vmem>>, vector<2x4xf32>
    tpu.vector_store %arg27[%c0_206, %c0_207], %443 {strides = array<i32>} : memref<2x4xf32, #tpu.memory_space<vmem>>, vector<2x4xf32>,
    return
  }
  func.func @transform_0(%arg0: i32) -> (i32, i32) {
    %c0_i32 = arith.constant 0 : i32
    %c0_i32_0 = arith.constant 0 : i32
    %c0_i32_1 = arith.constant 0 : i32
    return %c0_i32, %c0_i32_0 : i32, i32
  }
  func.func @transform_1(%arg0: i32) -> (i32, i32) {
    %c0_i32 = arith.constant 0 : i32
    %c0_i32_0 = arith.constant 0 : i32
    %c0_i32_1 = arith.constant 0 : i32
    return %c0_i32, %c0_i32_0 : i32, i32
  }
  func.func @transform_2(%arg0: i32) -> (i32, i32) {
    %c0_i32 = arith.constant 0 : i32
    %c0_i32_0 = arith.constant 0 : i32
    %c0_i32_1 = arith.constant 0 : i32
    return %c0_i32, %c0_i32_0 : i32, i32
  }
  func.func @transform_3(%arg0: i32) -> (i32, i32) {
    %c0_i32 = arith.constant 0 : i32
    %c0_i32_0 = arith.constant 0 : i32
    %c0_i32_1 = arith.constant 0 : i32
    return %c0_i32, %c0_i32_0 : i32, i32
  }
  func.func @transform_4(%arg0: i32) -> (i32, i32) {
    %c0_i32 = arith.constant 0 : i32
    %c0_i32_0 = arith.constant 0 : i32
    %c0_i32_1 = arith.constant 0 : i32
    return %c0_i32, %c0_i32_0 : i32, i32
  }
  func.func @transform_5(%arg0: i32) -> (i32, i32) {
    %c0_i32 = arith.constant 0 : i32
    %c0_i32_0 = arith.constant 0 : i32
    %c0_i32_1 = arith.constant 0 : i32
    return %c0_i32, %c0_i32_0 : i32, i32
  }
  func.func @transform_6(%arg0: i32) -> (i32, i32) {
    %c0_i32 = arith.constant 0 : i32
    %c0_i32_0 = arith.constant 0 : i32
    %c0_i32_1 = arith.constant 0 : i32
    return %c0_i32, %c0_i32_0 : i32, i32
  }
  func.func @transform_7(%arg0: i32) -> (i32, i32, i32) {
    %c0_i32 = arith.constant 0 : i32
    %c0_i32_0 = arith.constant 0 : i32
    %c0_i32_1 = arith.constant 0 : i32
    %c0_i32_2 = arith.constant 0 : i32
    return %c0_i32, %c0_i32_0, %c0_i32_1 : i32, i32, i32
  }
  func.func @transform_8(%arg0: i32) -> (i32, i32, i32) {
    %c0_i32 = arith.constant 0 : i32
    %c0_i32_0 = arith.constant 0 : i32
    %c0_i32_1 = arith.constant 0 : i32
    %c0_i32_2 = arith.constant 0 : i32
    return %c0_i32, %c0_i32_0, %c0_i32_1 : i32, i32, i32
  }
  func.func @transform_9(%arg0: i32) -> (i32, i32) {
    %c0_i32 = arith.constant 0 : i32
    %c0_i32_0 = arith.constant 0 : i32
    %c0_i32_1 = arith.constant 0 : i32
    return %c0_i32, %c0_i32_0 : i32, i32
  }
  func.func @transform_10(%arg0: i32) -> (i32, i32) {
    %c0_i32 = arith.constant 0 : i32
    %c0_i32_0 = arith.constant 0 : i32
    %c0_i32_1 = arith.constant 0 : i32
    return %c0_i32, %c0_i32_0 : i32, i32
  }
  func.func @transform_11(%arg0: i32) -> (i32, i32) {
    %c0_i32 = arith.constant 0 : i32
    %c0_i32_0 = arith.constant 0 : i32
    %c0_i32_1 = arith.constant 0 : i32
    return %c0_i32, %c0_i32_0 : i32, i32
  }
  func.func @transform_12(%arg0: i32) -> (i32, i32) {
    %c0_i32 = arith.constant 0 : i32
    %c0_i32_0 = arith.constant 0 : i32
    %c0_i32_1 = arith.constant 0 : i32
    return %c0_i32, %c0_i32_0 : i32, i32
  }
  func.func @transform_13(%arg0: i32) -> (i32, i32) {
    %c0_i32 = arith.constant 0 : i32
    %c0_i32_0 = arith.constant 0 : i32
    %c0_i32_1 = arith.constant 0 : i32
    return %c0_i32, %c0_i32_0 : i32, i32
  }
  func.func @transform_14(%arg0: i32) -> (i32, i32) {
    %c0_i32 = arith.constant 0 : i32
    %c0_i32_0 = arith.constant 0 : i32
    %c0_i32_1 = arith.constant 0 : i32
    return %c0_i32, %c0_i32_0 : i32, i32
  }
  func.func @transform_15(%arg0: i32) -> (i32, i32) {
    %c0_i32 = arith.constant 0 : i32
    %c0_i32_0 = arith.constant 0 : i32
    %c0_i32_1 = arith.constant 0 : i32
    return %c0_i32, %c0_i32_0 : i32, i32
  }
  func.func @transform_16(%arg0: i32) -> (i32, i32, i32) {
    %c0_i32 = arith.constant 0 : i32
    %c0_i32_0 = arith.constant 0 : i32
    %c0_i32_1 = arith.constant 0 : i32
    %c0_i32_2 = arith.constant 0 : i32
    return %c0_i32, %c0_i32_0, %c0_i32_1 : i32, i32, i32
  }
  func.func @transform_17(%arg0: i32) -> (i32, i32, i32) {
    %c0_i32 = arith.constant 0 : i32
    %c0_i32_0 = arith.constant 0 : i32
    %c0_i32_1 = arith.constant 0 : i32
    %c0_i32_2 = arith.constant 0 : i32
    return %c0_i32, %c0_i32_0, %c0_i32_1 : i32, i32, i32
  }
  func.func @transform_18(%arg0: i32) -> (i32, i32) {
    %c0_i32 = arith.constant 0 : i32
    %c0_i32_0 = arith.constant 0 : i32
    %c0_i32_1 = arith.constant 0 : i32
    return %c0_i32, %c0_i32_0 : i32, i32
  }
  func.func @transform_19(%arg0: i32) -> (i32, i32) {
    %c0_i32 = arith.constant 0 : i32
    %c0_i32_0 = arith.constant 0 : i32
    %c0_i32_1 = arith.constant 0 : i32
    return %c0_i32, %c0_i32_0 : i32, i32
  }
  func.func @transform_20(%arg0: i32) -> (i32, i32) {
    %c0_i32 = arith.constant 0 : i32
    %c0_i32_0 = arith.constant 0 : i32
    %c0_i32_1 = arith.constant 0 : i32
    return %c0_i32, %c0_i32_0 : i32, i32
  }
  func.func @transform_21(%arg0: i32) -> (i32, i32) {
    %c0_i32 = arith.constant 0 : i32
    %c0_i32_0 = arith.constant 0 : i32
    %c0_i32_1 = arith.constant 0 : i32
    return %c0_i32, %c0_i32_0 : i32, i32
  }
  func.func @transform_22(%arg0: i32) -> (i32, i32) {
    %c0_i32 = arith.constant 0 : i32
    %c0_i32_0 = arith.constant 0 : i32
    %c0_i32_1 = arith.constant 0 : i32
    return %c0_i32, %c0_i32_0 : i32, i32
  }
  func.func @transform_23(%arg0: i32) -> (i32, i32) {
    %c0_i32 = arith.constant 0 : i32
    %c0_i32_0 = arith.constant 0 : i32
    %c0_i32_1 = arith.constant 0 : i32
    return %c0_i32, %c0_i32_0 : i32, i32
  }
  func.func @transform_24(%arg0: i32) -> (i32, i32) {
    %c0_i32 = arith.constant 0 : i32
    %c0_i32_0 = arith.constant 0 : i32
    %c0_i32_1 = arith.constant 0 : i32
    return %c0_i32, %c0_i32_0 : i32, i32
  }
  func.func @transform_25(%arg0: i32) -> (i32, i32) {
    %c0_i32 = arith.constant 0 : i32
    %c0_i32_0 = arith.constant 0 : i32
    %c0_i32_1 = arith.constant 0 : i32
    return %c0_i32, %c0_i32_0 : i32, i32
  }
  func.func @transform_26(%arg0: i32) -> (i32, i32) {
    %c0_i32 = arith.constant 0 : i32
    %c0_i32_0 = arith.constant 0 : i32
    %c0_i32_1 = arith.constant 0 : i32
    return %c0_i32, %c0_i32_0 : i32, i32
  }
  func.func @transform_27(%arg0: i32) -> (i32, i32) {
    %c0_i32 = arith.constant 0 : i32
    %c0_i32_0 = arith.constant 0 : i32
    %c0_i32_1 = arith.constant 0 : i32
    return %c0_i32, %c0_i32_0 : i32, i32
  }
}

</mosaic_0001>

<bundles_post_ra>
// kernel: inception_forward.1
= control target key start
LH: loop header
LB: loop body
LE: loop exit
PB: predicated region body
PF: predicated region fallthrough
CT: control target
= control target key end

     0   :  { %s4748_s0 = inlined_call_operand.vmem [shape: f32[32,5], index: 0, kind: input, shape index: {}]   ;;  %s4749_s1 = inlined_call_operand.vmem [shape: f32[5,16], index: 1, kind: input, shape index: {}]   ;;  %s4750_s2 = inlined_call_operand.vmem [shape: f32[1,16], index: 2, kind: input, shape index: {}]   ;;  %s4751_s3 = inlined_call_operand.vmem [shape: f32[1,16], index: 3, kind: input, shape index: {}]   ;;  %s4752_s4 = inlined_call_operand.vmem [shape: bf16[16,16], index: 4, kind: input, shape index: {}]   ;;  %s4753_s5 = inlined_call_operand.vmem [shape: f32[1,16], index: 5, kind: input, shape index: {}]   ;;  %s4754_s6 = inlined_call_operand.vmem [shape: f32[1,16], index: 6, kind: input, shape index: {}]   ;;  %s4755_s7 = inlined_call_operand.vmem [shape: f32[5,32,32], index: 7, kind: input, shape index: {}]   ;;  %s4756_s8 = inlined_call_operand.vmem [shape: bf16[5,16,32], index: 8, kind: input, shape index: {}]   ;;  %s4757_s9 = inlined_call_operand.vmem [shape: f32[5,16], index: 9, kind: input, shape index: {}]   ;;  %s4758_s10 = inlined_call_operand.vmem [shape: bf16[16,16], index: 10, kind: input, shape index: {}]   ;;  %s4759_s11 = inlined_call_operand.vmem [shape: f32[1,16], index: 11, kind: input, shape index: {}]   ;;  %s4760_s12 = inlined_call_operand.vmem [shape: f32[1,16], index: 12, kind: input, shape index: {}]   ;;  %s4761_s13 = inlined_call_operand.vmem [shape: bf16[16,32], index: 13, kind: input, shape index: {}]   ;;  %s4762_s14 = inlined_call_operand.vmem [shape: f32[1,32], index: 14, kind: input, shape index: {}]   ;;  %s4763_s15 = inlined_call_operand.vmem [shape: f32[1,32], index: 15, kind: input, shape index: {}]   ;;  %s4764_s16 = inlined_call_operand.vmem [shape: f32[5,16,32], index: 16, kind: input, shape index: {}]   ;;  %s4765_s17 = inlined_call_operand.vmem [shape: bf16[5,32,64], index: 17, kind: input, shape index: {}]   ;;  %s4766_s18 = inlined_call_operand.vmem [shape: f32[5,32], index: 18, kind: input, shape index: {}]   ;;  %s4767_s19 = inlined_call_operand.vmem [shape: bf16[32,32], index: 19, kind: input, shape index: {}]   ;;  %s4768_s20 = inlined_call_operand.vmem [shape: f32[1,32], index: 20, kind: input, shape index: {}]   ;;  %s4769_s21 = inlined_call_operand.vmem [shape: f32[1,32], index: 21, kind: input, shape index: {}]   ;;  %s4770_s22 = inlined_call_operand.vmem [shape: f32[2,16], index: 22, kind: input, shape index: {}]   ;;  %s4771_s23 = inlined_call_operand.vmem [shape: f32[1,32], index: 23, kind: input, shape index: {}]   ;;  %s4772_s24 = inlined_call_operand.vmem [shape: f32[32,4], index: 24, kind: input, shape index: {}]   ;;  %s4773_s25 = inlined_call_operand.vmem [shape: f32[1,4], index: 25, kind: input, shape index: {}]   ;;  %s4774_s26 = inlined_call_operand.hbm [shape: f32[2,4], index: 26, kind: output, shape index: {0}]   ;;  %s4775_s27 = inlined_call_operand.hbm [shape: f32[2,32], index: 27, kind: output, shape index: {1}]  }
   0x1   :  { %4779 = sst [smem:[#allocation8_spill]] %s4748_s0 }
   0x2   :  { %4780 = sst [smem:[#allocation9_spill]] %s4749_s1 }
   0x3   :  { %4781 = sst [smem:[#allocation10_spill]] %s4750_s2 }
   0x4   :  { %4782 = sst [smem:[#allocation11_spill]] %s4751_s3 }
   0x5   :  { %4783 = sst [smem:[#allocation12_spill]] %s4752_s4 }
   0x6   :  { %4784 = sst [smem:[#allocation13_spill]] %s4753_s5 }
   0x7   :  { %4785 = sst [smem:[#allocation14_spill]] %s4754_s6 }
   0x8   :  { %4786 = sst [smem:[#allocation15_spill]] %s4755_s7 }
   0x9   :  { %4787 = sst [smem:[#allocation16_spill]] %s4756_s8 }
   0xa   :  { %4788 = sst [smem:[#allocation17_spill]] %s4757_s9 }
   0xb   :  { %4789 = sst [smem:[#allocation18_spill]] %s4758_s10 }
   0xc   :  { %4790 = sst [smem:[#allocation19_spill]] %s4759_s11 }
   0xd   :  { %33 = vsyncpa [#allocation3], 0  ;;  %s4791_s8 = sld [smem:[#allocation9_spill]]  ;;  %vm106_vm0 = vcmask 1044480   ;;  %s4792_s5 = sld [smem:[#allocation8_spill]]  ;;  %vm93_vm1 = vcmask 39936  }
  0x13   :  { %v92_v0 = vld [vmem:[%s4791_s8] sm:$0x1f]  ;;  %v89_v2 = vld [vmem:[%s4792_s5 + $0x8] sm:$0xff]  ;;  %v90_v3 = vld [vmem:[%s4792_s5 + $0x10] sm:$0xff] }
  0x14   :  { %v88_v1 = vld [vmem:[%s4792_s5] sm:$0xff]  ;;  %3329 = vmatprep.subr.msk.mxu0 %vm106_vm0, %v92_v0  ;;  %v91_v4 = vld [vmem:[%s4792_s5 + $0x18] sm:$0xff] }
  0x15   :  { %3331 = vmatprep.mubr.msk.f32.mxu0 %vm93_vm1, %v88_v1  ;;  %3330 = vmatpush3.msk.msra.mxu0 %vm106_vm0, %v92_v0 }
  0x16   :  { %3332 = vmatmul.mubr.msk.f32.vlgmr.msra.gmra.mrb[0].mxu0 %vm93_vm1, %v89_v2 }
  0x17   :  { %3334 = vmatprep.mubr.msk.f32.mxu0 %vm93_vm1, %v90_v3 }
  0x1a   :  { %3335 = vmatmul.mubr.msk.f32.gmra.mrb[2].mxu0 %vm93_vm1, %v91_v4 }
  0x1b   :  { %34 = vsyncpa [#allocation5], 0  ;;  %s4793_s3 = sld [smem:[#allocation12_spill]]  ;;  %vm195_vm2 = vcmask 130048   ;;  %v237_v47 = vlaneseq  ;;  %s4794_s8 = sld [smem:[#allocation10_spill]]  ;;  %vm399_vm3 = vcmask 261120  }
  0x1c   :  { %s4795_s5 = sld [smem:[#allocation11_spill]]  ;;  %s4796_s10 = sld [smem:[#allocation15_spill]]  ;;  %vm1339_vm4 = vcmask 261248   ;;  %vm3807_vm5 = vmmov 0   ;;  %vm2612_vm6 = vcmask 523520   ;;  %vm2960_vm7 = vcmask 254976  }
  0x1d   :  { %v3979_v48 = vshrl.u32 %v237_v47, 7  ;;  %s4797_s2 = sld [smem:[#allocation13_spill]]  ;;  %s4798_s4 = sld [smem:[#allocation14_spill]] }
  0x1e   :  { %s4800_s29 = sld [smem:[#allocation17_spill]]  ;;  %s3804_s1 = smov 112  }
  0x1f   :  { %v3985_v50 = vsub.s32 0, %v3979_v48  ;;  %s3805_s6 = smov 16  }
  0x21   :  { %v3706_v5 = vld [vmem:[%s4793_s3] sm:$0xff]   ;;  %s4801_s3 = sld [smem:[#allocation18_spill]] }
  0x22   :  { %3337 = vmatprep.subr.bf16.mxu1 %v3706_v5  ;;  %v234_v49 = vld [vmem:[%s4794_s8] sm:$0x1]  ;;  %s4802_s8 = sld [smem:[#allocation19_spill]] }
  0x23   :  { %3338 = vmatpush3.bf16.msra.mxu1 %v3706_v5  ;;  %v246_v53 = vld [vmem:[%s4795_s5] sm:$0x1] }
  0xe9   :  { %v3333_v6 = vpop.f32.mrb[0].mxu0 }
  0xea   :  { %v197_v7 = vsel %vm195_vm2, %v3333_v6, 0.0  ;;  %v176_v8 = vpop.f32.mrb[1].mxu0 }
  0xeb   :  { %v196_v9 = vsel %vm195_vm2, %v176_v8, 0.0 }
  0xec   :  { %v198_v10 = vadd.f32 %v197_v7, %v196_v9 }
  0xed   :  { %v3336_v11 = vpop.f32.mrb[2].mxu0 }
  0xee   :  { %v186_v12 = vpop.f32.mrb[3].mxu0  ;;  %v201_v15 = vsel %vm195_vm2, %v3336_v11, 0.0 }
  0xef   :  { %v199_v13 = vsel %vm195_vm2, %v186_v12, 0.0 }
  0xf0   :  { %v200_v14 = vadd.f32 %v199_v13, %v198_v10 }
  0xf2   :  { %v202_v16 = vadd.f32 %v201_v15, %v200_v14 }
  0xf4   :  { %v203_v17 = vrot.slane %v202_v16, 4 }
  0xf6   :  { %v204_v18 = vadd.f32 %v203_v17, %v202_v16 }
  0xf8   :  { %v205_v19 = vrot.slane %v204_v18, 2 }
  0xfa   :  { %v206_v20 = vadd.f32 %v205_v19, %v204_v18 }
  0xfc   :  { %v207_v21 = vrot.slane %v206_v20, 1 }
  0xfe   :  { %v208_v22 = vadd.f32 %v207_v21, %v206_v20 }
 0x100   :  { %v209_v23 = vmul.f32 0.03125, %v208_v22 }
 0x102   :  { %v210_v24 = vsub.f32 %v176_v8, %v209_v23  ;;  %v211_v25 = vsub.f32 %v3333_v6, %v209_v23  ;;  %v212_v26 = vsub.f32 %v186_v12, %v209_v23  ;;  %v213_v27 = vsub.f32 %v3336_v11, %v209_v23 }
 0x104   :  { %v214_v28 = vmul.f32 %v210_v24, %v210_v24  ;;  %v215_v29 = vmul.f32 %v211_v25, %v211_v25  ;;  %v216_v30 = vmul.f32 %v212_v26, %v212_v26  ;;  %v217_v31 = vmul.f32 %v213_v27, %v213_v27 }
 0x106   :  { %v218_v32 = vsel %vm195_vm2, %v214_v28, 0.0  ;;  %v219_v33 = vsel %vm195_vm2, %v215_v29, 0.0  ;;  %v221_v35 = vsel %vm195_vm2, %v216_v30, 0.0  ;;  %v223_v37 = vsel %vm195_vm2, %v217_v31, 0.0 }
 0x107   :  { %v220_v34 = vadd.f32 %v219_v33, %v218_v32 }
 0x109   :  { %v222_v36 = vadd.f32 %v221_v35, %v220_v34 }
 0x10b   :  { %v224_v38 = vadd.f32 %v223_v37, %v222_v36 }
 0x10d   :  { %v225_v39 = vrot.slane %v224_v38, 4 }
 0x10f   :  { %v226_v40 = vadd.f32 %v225_v39, %v224_v38 }
 0x111   :  { %v227_v41 = vrot.slane %v226_v40, 2 }
 0x113   :  { %v228_v42 = vadd.f32 %v227_v41, %v226_v40 }
 0x115   :  { %v229_v43 = vrot.slane %v228_v42, 1 }
 0x117   :  { %v230_v44 = vadd.f32 %v229_v43, %v228_v42 }
 0x119   :  { %v231_v45 = vmul.f32 0.03125, %v230_v44 }
 0x11b   :  { %v232_v46 = vadd.f32 1e-05, %v231_v45 }
 0x11d   :  { %3726 = vrsqrt.f32 %v232_v46 }
 0x127   :  { %v3727_v51 = vpop.eup %3726 }
 0x128   :  { %v235_v52 = vmul.f32 %v3727_v51, %v234_v49 }
 0x12a   :  { %v240_v54 = vrot.slane %v235_v52, %v3985_v50  ;;  %v247_v55 = vmul.f32 %v235_v52, %v209_v23 }
 0x12c   :  { %v244_v56 = vmul.f32 %v240_v54, %v186_v12  ;;  %v248_v57 = vsub.f32 %v246_v53, %v247_v55  ;;  %v242_v58 = vmul.f32 %v240_v54, %v176_v8  ;;  %v243_v59 = vmul.f32 %v3333_v6, %v240_v54  ;;  %v395_v6 = vld [vmem:[%s4796_s10] sm:$0xff] }
 0x12d   :  { %v245_v60 = vmul.f32 %v3336_v11, %v240_v54  ;;  %3351 = vmatprep.mubr.msk.f32.mxu0 %vm399_vm3, %v395_v6  ;;  %v3104_v8 = vld [vmem:[%s4796_s10 + $0x60] sm:$0xff] }
 0x12e   :  { %v253_v61 = vrot.slane %v248_v57, %v3985_v50  ;;  %v366_v53 = vld [vmem:[%s4797_s2] sm:$0x1]  ;;  %s4799_s2 = sld [smem:[#allocation16_spill]] }
 0x130   :  { %v257_v62 = vadd.f32 %v253_v61, %v244_v56  ;;  %v255_v63 = vadd.f32 %v253_v61, %v242_v58  ;;  %v256_v0 = vadd.f32 %v253_v61, %v243_v59  ;;  %v258_v1 = vadd.f32 %v253_v61, %v245_v60  ;;  %v368_v56 = vld [vmem:[%s4798_s4] sm:$0x1] }
 0x132   :  { %v261_v2 = vmax.f32 %v257_v62, 0.0  ;;  %v259_v3 = vmax.f32 %v255_v63, 0.0  ;;  %v260_v4 = vmax.f32 %v256_v0, 0.0  ;;  %v262_v5 = vmax.f32 %v258_v1, 0.0 }
 0x134   :  { %v263_v7 = vpack.c.bf16 %v260_v4, %v259_v3  ;;  %v264_v9 = vpack.c.bf16 %v262_v5, %v261_v2 }
 0x136   :  { %3339 = vmatprep.mubr.msk.bf16.mxu1 %vm195_vm2, %v263_v7 }
 0x137   :  { %3340 = vmatmul.mubr.msk.bf16.vlgmr.msra.gmra.mrb[0].mxu1 %vm195_vm2, %v264_v9 }
 0x138   :  { %3393 = vmatprep.mubr.msk.f32.mxu1 %vm399_vm3, %v3104_v8 }
 0x20a   :  { %v3341_v10 = vpop.f32.mrb[0].mxu1 }
 0x20b   :  { %v313_v11 = vpop.f32.mrb[1].mxu1  ;;  %v331_v17 = vsel %vm195_vm2, %v3341_v10, 0.0 }
 0x20c   :  { %v3342_v12 = vpop.f32.mrb[2].mxu1  ;;  %v328_v14 = vsel %vm195_vm2, %v313_v11, 0.0 }
 0x20d   :  { %v316_v13 = vpop.f32.mrb[3].mxu1  ;;  %v333_v19 = vsel %vm195_vm2, %v3342_v12, 0.0 }
 0x20e   :  { %v329_v15 = vsel %vm195_vm2, %v316_v13, 0.0 }
 0x20f   :  { %v330_v16 = vadd.f32 %v329_v15, %v328_v14  ;;  %v398_v15 = vld [vmem:[%s4796_s10 + $0x18] sm:$0xff] }
 0x211   :  { %v332_v18 = vadd.f32 %v331_v17, %v330_v16  ;;  %v3107_v16 = vld [vmem:[%s4796_s10 + $0x78] sm:$0xff]  ;;  %v3088_v17 = vld [vmem:[%s4796_s10 + $0x20] sm:$0xff] }
 0x213   :  { %v334_v20 = vadd.f32 %v333_v19, %v332_v18  ;;  %v3089_v18 = vld [vmem:[%s4796_s10 + $0x28] sm:$0xff]  ;;  %v3090_v19 = vld [vmem:[%s4796_s10 + $0x30] sm:$0xff] }
 0x215   :  { %v335_v21 = vrot.slane %v334_v20, 4 }
 0x217   :  { %v336_v22 = vadd.f32 %v335_v21, %v334_v20  ;;  %v3091_v20 = vld [vmem:[%s4796_s10 + $0x38] sm:$0xff]  ;;  %v3096_v21 = vld [vmem:[%s4796_s10 + $0x40] sm:$0xff] }
 0x219   :  { %v337_v23 = vrot.slane %v336_v22, 2 }
 0x21b   :  { %v338_v24 = vadd.f32 %v337_v23, %v336_v22  ;;  %v3097_v22 = vld [vmem:[%s4796_s10 + $0x48] sm:$0xff]  ;;  %v3098_v23 = vld [vmem:[%s4796_s10 + $0x50] sm:$0xff] }
 0x21d   :  { %v339_v25 = vrot.slane %v338_v24, 1 }
 0x21f   :  { %v340_v26 = vadd.f32 %v339_v25, %v338_v24  ;;  %v3099_v24 = vld [vmem:[%s4796_s10 + $0x58] sm:$0xff]  ;;  %v3112_v25 = vld [vmem:[%s4796_s10 + $0x80] sm:$0xff] }
 0x221   :  { %v341_v27 = vmul.f32 0.03125, %v340_v26  ;;  %v3113_v26 = vld [vmem:[%s4796_s10 + $0x88] sm:$0xff] }
 0x223   :  { %v342_v28 = vsub.f32 %v313_v11, %v341_v27  ;;  %v343_v29 = vsub.f32 %v316_v13, %v341_v27  ;;  %v344_v30 = vsub.f32 %v3341_v10, %v341_v27  ;;  %v345_v31 = vsub.f32 %v3342_v12, %v341_v27 }
 0x225   :  { %v346_v32 = vmul.f32 %v342_v28, %v342_v28  ;;  %v347_v33 = vmul.f32 %v343_v29, %v343_v29  ;;  %v348_v34 = vmul.f32 %v344_v30, %v344_v30  ;;  %v349_v35 = vmul.f32 %v345_v31, %v345_v31  ;;  %v3115_v28 = vld [vmem:[%s4796_s10 + $0x98] sm:$0xff]  ;;  %v3707_v29 = vld [vmem:[%s4799_s2 + $0x8] sm:$0xff]   ;;  %v3708_v30 = vld [vmem:[%s4799_s2] sm:$0xff]  }
 0x227   :  { %v350_v36 = vsel %vm195_vm2, %v346_v32, 0.0  ;;  %v351_v37 = vsel %vm195_vm2, %v347_v33, 0.0  ;;  %v353_v39 = vsel %vm195_vm2, %v348_v34, 0.0  ;;  %v355_v41 = vsel %vm195_vm2, %v349_v35, 0.0 }
 0x228   :  { %v352_v38 = vadd.f32 %v351_v37, %v350_v36 }
 0x22a   :  { %v354_v40 = vadd.f32 %v353_v39, %v352_v38 }
 0x22c   :  { %v356_v42 = vadd.f32 %v355_v41, %v354_v40 }
 0x22e   :  { %v357_v43 = vrot.slane %v356_v42, 4 }
 0x230   :  { %v358_v44 = vadd.f32 %v357_v43, %v356_v42 }
 0x232   :  { %v359_v45 = vrot.slane %v358_v44, 2 }
 0x234   :  { %v360_v46 = vadd.f32 %v359_v45, %v358_v44 }
 0x236   :  { %v361_v47 = vrot.slane %v360_v46, 1 }
 0x238   :  { %v362_v49 = vadd.f32 %v361_v47, %v360_v46 }
 0x23a   :  { %v363_v51 = vmul.f32 0.03125, %v362_v49 }
 0x23c   :  { %v364_v52 = vadd.f32 1e-05, %v363_v51  ;;  %v3709_v51 = vld [vmem:[%s4799_s2 + $0x10] sm:$0xff]  }
 0x23e   :  { %3728 = vrsqrt.f32 %v364_v52 }
 0x248   :  { %v3729_v54 = vpop.eup %3728 }
 0x249   :  { %v367_v55 = vmul.f32 %v3729_v54, %v366_v53 }
 0x24b   :  { %v369_v57 = vmul.f32 %v367_v55, %v341_v27  ;;  %v375_v58 = vrot.slane %v367_v55, %v3985_v50  ;;  %v3114_v27 = vld [vmem:[%s4796_s10 + $0x90] sm:$0xff] }
 0x24d   :  { %v370_v59 = vsub.f32 %v368_v56, %v369_v57  ;;  %v377_v60 = vmul.f32 %v375_v58, %v313_v11  ;;  %v378_v61 = vmul.f32 %v375_v58, %v316_v13  ;;  %v379_v62 = vmul.f32 %v3341_v10, %v375_v58  ;;  %v396_v10 = vld [vmem:[%s4796_s10 + $0x8] sm:$0xff]  ;;  %v3106_v13 = vld [vmem:[%s4796_s10 + $0x70] sm:$0xff] }
 0x24e   :  { %v380_v63 = vmul.f32 %v3342_v12, %v375_v58  ;;  %v3105_v11 = vld [vmem:[%s4796_s10 + $0x68] sm:$0xff]  ;;  %v397_v12 = vld [vmem:[%s4796_s10 + $0x10] sm:$0xff] }
 0x24f   :  { %v385_v0 = vrot.slane %v370_v59, %v3985_v50 }
 0x251   :  { %v387_v1 = vadd.f32 %v385_v0, %v377_v60  ;;  %v388_v2 = vadd.f32 %v385_v0, %v378_v61  ;;  %v389_v3 = vadd.f32 %v385_v0, %v379_v62  ;;  %v390_v4 = vadd.f32 %v385_v0, %v380_v63 }
 0x253   :  { %v391_v5 = vmax.f32 %v387_v1, 0.0  ;;  %v392_v7 = vmax.f32 %v388_v2, 0.0  ;;  %v393_v9 = vmax.f32 %v389_v3, 0.0  ;;  %v394_v6 = vmax.f32 %v390_v4, 0.0 }
 0x255   :  { %v3576_v8 = vpack.c.bf16 %v392_v7, %v391_v5  ;;  %v3580_v14 = vpack.c.bf16 %v394_v6, %v393_v9 }
 0x257   :  { %3577 = vmatprep.subr.bf16.mxu0 %v3576_v8  ;;  %3601 = vmatprep.subr.bf16.mxu1 %v3576_v8 }
 0x258   :  { %3579 = vmatpush3.bf16.msra.mxu0 %v3576_v8  ;;  %3603 = vmatpush3.bf16.msra.mxu1 %v3576_v8 }
 0x259   :  { %3581 = vmatprep.subr.bf16.mxu0 %v3580_v14  ;;  %3605 = vmatprep.subr.bf16.mxu1 %v3580_v14 }
 0x25c   :  { %3583 = vmatpush3.bf16.msra.mxu0 %v3580_v14  ;;  %3607 = vmatpush3.bf16.msra.mxu1 %v3580_v14 }
 0x25d   :  { %3585 = vmatprep.subr.bf16.mxu0 %v3576_v8  ;;  %3413 = vmatprep.subr.bf16.mxu1 %v3707_v29 }
 0x25f   :  { %3352 = vmatmul.mubr.msk.f32.vlgmr.msra.gmra.mrb[4].mxu0 %vm399_vm3, %v396_v10  ;;  %3394 = vmatmul.mubr.msk.f32.vlgmr.msra.gmra.mrb[4].mxu1 %vm399_vm3, %v3105_v11 }
 0x260   :  { %3587 = vmatpush3.bf16.msra.mxu0 %v3576_v8  ;;  %3354 = vmatprep.mubr.msk.f32.mxu0 %vm399_vm3, %v397_v12 }
 0x261   :  { %3589 = vmatprep.subr.bf16.mxu0 %v3580_v14  ;;  %3396 = vmatprep.mubr.msk.f32.mxu1 %vm399_vm3, %v3106_v13 }
 0x262   :  { %3414 = vmatpush3.bf16.msra.mxu1 %v3707_v29 }
 0x263   :  { %3355 = vmatmul.mubr.msk.f32.gmra.mrb[6].mxu0 %vm399_vm3, %v398_v15  ;;  %3397 = vmatmul.mubr.msk.f32.gmra.mrb[6].mxu1 %vm399_vm3, %v3107_v16 }
 0x264   :  { %3591 = vmatpush3.bf16.msra.mxu0 %v3580_v14  ;;  %3365 = vmatprep.mubr.msk.f32.mxu0 %vm399_vm3, %v3088_v17 }
 0x265   :  { %3593 = vmatprep.subr.bf16.mxu0 %v3576_v8  ;;  %3419 = vmatprep.subr.bf16.mxu1 %v3708_v30 }
 0x267   :  { %3366 = vmatmul.mubr.msk.f32.vlgmr.msra.gmra.mrb[8].mxu0 %vm399_vm3, %v3089_v18 }
 0x268   :  { %3595 = vmatpush3.bf16.msra.mxu0 %v3576_v8  ;;  %3368 = vmatprep.mubr.msk.f32.mxu0 %vm399_vm3, %v3090_v19 }
 0x269   :  { %3597 = vmatprep.subr.bf16.mxu0 %v3580_v14 }
 0x26b   :  { %3369 = vmatmul.mubr.msk.f32.gmra.mrb[10].mxu0 %vm399_vm3, %v3091_v20 }
 0x26c   :  { %3599 = vmatpush3.bf16.msra.mxu0 %v3580_v14  ;;  %3379 = vmatprep.mubr.msk.f32.mxu0 %vm399_vm3, %v3096_v21  ;;  %v3710_v21 = vld [vmem:[%s4799_s2 + $0x18] sm:$0xff]  }
 0x26d   :  { %3609 = vmatprep.subr.bf16.mxu0 %v3576_v8 }
 0x26f   :  { %3380 = vmatmul.mubr.msk.f32.vlgmr.msra.gmra.mrb[12].mxu0 %vm399_vm3, %v3097_v22 }
 0x270   :  { %3611 = vmatpush3.bf16.msra.mxu0 %v3576_v8  ;;  %3382 = vmatprep.mubr.msk.f32.mxu0 %vm399_vm3, %v3098_v23 }
 0x271   :  { %3613 = vmatprep.subr.bf16.mxu0 %v3580_v14 }
 0x273   :  { %3383 = vmatmul.mubr.msk.f32.gmra.mrb[14].mxu0 %vm399_vm3, %v3099_v24 }
 0x274   :  { %3615 = vmatpush3.bf16.msra.mxu0 %v3580_v14  ;;  %3407 = vmatprep.mubr.msk.f32.mxu0 %vm399_vm3, %v3112_v25 }
 0x277   :  { %3408 = vmatmul.mubr.msk.f32.vlgmr.msra.gmra.mrb[16].mxu0 %vm399_vm3, %v3113_v26 }
 0x278   :  { %3410 = vmatprep.mubr.msk.f32.mxu0 %vm399_vm3, %v3114_v27 }
 0x27b   :  { %3411 = vmatmul.mubr.msk.f32.gmra.mrb[18].mxu0 %vm399_vm3, %v3115_v28 }
 0x332   :  { %v3353_v31 = vpop.f32.mrb[4].mxu0  ;;  %v4096_v32 = vpop.f32.mrb[4].mxu1 }
 0x333   :  { %v478_v33 = vpop.f32.mrb[5].mxu0  ;;  %v4098_v34 = vpop.f32.mrb[5].mxu1 }
 0x334   :  { %v905_v35 = vpack.c.bf16 %v3353_v31, %v478_v33  ;;  %v911_v36 = vpack.c.bf16 %v4096_v32, %v4098_v34 }
 0x336   :  { %v3356_v37 = vpop.f32.mrb[6].mxu0  ;;  %v4102_v38 = vpop.f32.mrb[6].mxu1 }
 0x337   :  { %v488_v39 = vpop.f32.mrb[7].mxu0  ;;  %v4104_v40 = vpop.f32.mrb[7].mxu1 }
 0x338   :  { %v906_v41 = vpack.c.bf16 %v3356_v37, %v488_v39  ;;  %v912_v42 = vpack.c.bf16 %v4102_v38, %v4104_v40 }
 0x33a   :  { %v3367_v43 = vpop.f32.mrb[8].mxu0 }
 0x33b   :  { %v580_v44 = vpop.f32.mrb[9].mxu0 }
 0x33c   :  { %v907_v45 = vpack.c.bf16 %v3367_v43, %v580_v44 }
 0x33e   :  { %v3370_v46 = vpop.f32.mrb[10].mxu0  ;;  %3415 = vmatprep.mubr.msk.bf16.mxu1 %vm195_vm2, %v907_v45 }
 0x33f   :  { %v590_v47 = vpop.f32.mrb[11].mxu0 }
 0x340   :  { %v908_v49 = vpack.c.bf16 %v3370_v46, %v590_v47 }
 0x342   :  { %v4112_v52 = vpop.f32.mrb[12].mxu0  ;;  %3416 = vmatmul.mubr.msk.bf16.vlgmr.msra.gmra.mrb[8].mxu1 %vm195_vm2, %v908_v49 }
 0x343   :  { %v4115_v53 = vpop.f32.mrb[13].mxu0  ;;  %3421 = vmatprep.mubr.msk.bf16.mxu1 %vm195_vm2, %v905_v35  ;;  %v1247_v54 = vmax.f32 %v3367_v43, %v4112_v52  ;;  %v1255_v55 = vadd.f32 %v4112_v52, %v3367_v43  ;;  %3420 = vmatpush3.bf16.msra.mxu1 %v3708_v30 }
 0x344   :  { %v909_v56 = vpack.c.bf16 %v4112_v52, %v4115_v53  ;;  %v1246_v57 = vmax.f32 %v580_v44, %v4115_v53  ;;  %v1254_v58 = vadd.f32 %v4115_v53, %v580_v44  ;;  %3425 = vmatprep.subr.bf16.mxu1 %v3709_v51 }
 0x345   :  { %v4125_v59 = vmax.f32 %v1247_v54, %v4096_v32  ;;  %v1259_v60 = vadd.f32 %v4096_v32, %v1255_v55 }
 0x346   :  { %v4129_v61 = vmax.f32 %v1246_v57, %v4098_v34  ;;  %v1258_v62 = vadd.f32 %v1254_v58, %v4098_v34  ;;  %v4132_v63 = vpop.f32.mrb[14].mxu0 }
 0x347   :  { %v4134_v0 = vmul.f32 0.33333334, %v1259_v60  ;;  %v1434_v1 = vsel %vm195_vm2, %v4125_v59, 0.0  ;;  %v4138_v2 = vpop.f32.mrb[15].mxu0  ;;  %v1249_v3 = vmax.f32 %v3370_v46, %v4132_v63  ;;  %v1257_v4 = vadd.f32 %v4132_v63, %v3370_v46 }
 0x348   :  { %v4142_v5 = vmul.f32 0.33333334, %v1258_v62  ;;  %v1433_v7 = vsel %vm195_vm2, %v4129_v61, 0.0  ;;  %v910_v9 = vpack.c.bf16 %v4132_v63, %v4138_v2  ;;  %v1248_v6 = vmax.f32 %v590_v47, %v4138_v2 }
 0x349   :  { %v1494_v8 = vsel %vm195_vm2, %v4134_v0, 0.0  ;;  %v1435_v14 = vadd.f32 %v1434_v1, %v1433_v7  ;;  %v4152_v10 = vmax.f32 %v1249_v3, %v4102_v38  ;;  %v1261_v11 = vadd.f32 %v4102_v38, %v1257_v4 }
 0x34a   :  { %v1493_v12 = vsel %vm195_vm2, %v4142_v5, 0.0  ;;  %v4158_v13 = vmax.f32 %v1248_v6, %v4104_v40  ;;  %v1256_v15 = vadd.f32 %v4138_v2, %v590_v47  ;;  %v4161_v16 = vpop.f32.mrb[16].mxu0  ;;  %v3711_v47 = vld [vmem:[%s4799_s2 + $0x20] sm:$0xff]  }
 0x34b   :  { %v1495_v17 = vadd.f32 %v1494_v8, %v1493_v12  ;;  %v4163_v18 = vpop.f32.mrb[17].mxu0  ;;  %v4173_v24 = vmul.f32 0.33333334, %v1261_v11  ;;  %v1438_v25 = vsel %vm195_vm2, %v4152_v10, 0.0 }
 0x34c   :  { %v1260_v19 = vadd.f32 %v1256_v15, %v4104_v40  ;;  %v1436_v20 = vsel %vm195_vm2, %v4158_v13, 0.0  ;;  %v913_v22 = vpack.c.bf16 %v4161_v16, %v4163_v18 }
 0x34d   :  { %v1437_v23 = vadd.f32 %v1436_v20, %v1435_v14  ;;  %v1498_v37 = vsel %vm195_vm2, %v4173_v24, 0.0 }
 0x34e   :  { %v4177_v26 = vmul.f32 0.33333334, %v1260_v19  ;;  %3422 = vmatmul.mubr.msk.bf16.vlgmr.msra.gmra.mrb[8].mxu1 %vm195_vm2, %v906_v41  ;;  %v4180_v27 = vpop.f32.mrb[18].mxu0 }
 0x34f   :  { %v1439_v28 = vadd.f32 %v1438_v25, %v1437_v23  ;;  %3426 = vmatpush3.bf16.msra.mxu1 %v3709_v51  ;;  %3427 = vmatprep.mubr.msk.bf16.mxu1 %vm195_vm2, %v909_v56  ;;  %v4183_v29 = vpop.f32.mrb[19].mxu0 }
 0x350   :  { %v1496_v30 = vsel %vm195_vm2, %v4177_v26, 0.0  ;;  %3431 = vmatprep.subr.bf16.mxu1 %v3710_v21  ;;  %v914_v31 = vpack.c.bf16 %v4180_v27, %v4183_v29  ;;  %v4236_v27 = vld [vmem:[%s4800_s29] sm:$0x1f] }
 0x351   :  { %v1440_v33 = vrot.slane %v1439_v28, 4  ;;  %v1497_v35 = vadd.f32 %v1496_v30, %v1495_v17 }
 0x353   :  { %v1441_v39 = vadd.f32 %v1440_v33, %v1439_v28  ;;  %v1499_v41 = vadd.f32 %v1498_v37, %v1497_v35 }
 0x355   :  { %v1442_v43 = vrot.slane %v1441_v39, 2  ;;  %v1500_v44 = vrot.slane %v1499_v41, 4 }
 0x357   :  { %v1443_v45 = vadd.f32 %v1442_v43, %v1441_v39  ;;  %v1501_v46 = vadd.f32 %v1500_v44, %v1499_v41 }
 0x359   :  { %v1444_v49 = vrot.slane %v1443_v45, 1  ;;  %v1502_v51 = vrot.slane %v1501_v46, 2 }
 0x35a   :  { %3428 = vmatmul.mubr.msk.bf16.vlgmr.msra.gmra.mrb[8].mxu1 %vm195_vm2, %v910_v9 }
 0x35b   :  { %v1445_v54 = vadd.f32 %v1444_v49, %v1443_v45  ;;  %v1503_v55 = vadd.f32 %v1502_v51, %v1501_v46  ;;  %3432 = vmatpush3.bf16.msra.mxu1 %v3710_v21  ;;  %3433 = vmatprep.mubr.msk.bf16.mxu1 %vm195_vm2, %v911_v36 }
 0x35c   :  { %3437 = vmatprep.subr.bf16.mxu1 %v3711_v47 }
 0x35d   :  { %v1446_v56 = vmul.f32 0.03125, %v1445_v54  ;;  %v1504_v57 = vrot.slane %v1503_v55, 1 }
 0x35f   :  { %v1447_v58 = vsub.f32 %v4129_v61, %v1446_v56  ;;  %v1448_v60 = vsub.f32 %v4125_v59, %v1446_v56  ;;  %v1449_v62 = vsub.f32 %v4158_v13, %v1446_v56  ;;  %v1450_v1 = vsub.f32 %v4152_v10, %v1446_v56 }
 0x360   :  { %v1505_v3 = vadd.f32 %v1504_v57, %v1503_v55 }
 0x361   :  { %v1451_v4 = vmul.f32 %v1447_v58, %v1447_v58  ;;  %v1452_v7 = vmul.f32 %v1448_v60, %v1448_v60  ;;  %v1453_v9 = vmul.f32 %v1449_v62, %v1449_v62  ;;  %v1454_v32 = vmul.f32 %v1450_v1, %v1450_v1 }
 0x362   :  { %v4203_v6 = vmul.f32 0.03125, %v1505_v3  ;;  %v4231_v62 = vsub.s32 3, %v3979_v48 }
 0x363   :  { %v1455_v34 = vsel %vm195_vm2, %v1451_v4, 0.0  ;;  %v1456_v36 = vsel %vm195_vm2, %v1452_v7, 0.0  ;;  %v1458_v15 = vsel %vm195_vm2, %v1453_v9, 0.0  ;;  %v1460_v21 = vsel %vm195_vm2, %v1454_v32, 0.0 }
 0x364   :  { %v1457_v8 = vadd.f32 %v1456_v36, %v1455_v34  ;;  %v1507_v14 = vsub.f32 %v4142_v5, %v4203_v6  ;;  %v1508_v11 = vsub.f32 %v4134_v0, %v4203_v6  ;;  %v1509_v12 = vsub.f32 %v4177_v26, %v4203_v6 }
 0x365   :  { %v1510_v16 = vsub.f32 %v4173_v24, %v4203_v6  ;;  %v4241_v4 = vsub.s32 4, %v3979_v48 }
 0x366   :  { %v1459_v17 = vadd.f32 %v1458_v15, %v1457_v8  ;;  %v1511_v18 = vmul.f32 %v1507_v14, %v1507_v14  ;;  %v1512_v19 = vmul.f32 %v1508_v11, %v1508_v11  ;;  %v1513_v20 = vmul.f32 %v1509_v12, %v1509_v12  ;;  %3434 = vmatmul.mubr.msk.bf16.vlgmr.msra.gmra.mrb[8].mxu1 %vm195_vm2, %v912_v42 }
 0x367   :  { %3438 = vmatpush3.bf16.msra.mxu1 %v3711_v47  ;;  %3439 = vmatprep.mubr.msk.bf16.mxu1 %vm195_vm2, %v913_v22  ;;  %v1514_v25 = vmul.f32 %v1510_v16, %v1510_v16 }
 0x368   :  { %v1461_v23 = vadd.f32 %v1460_v21, %v1459_v17  ;;  %v1515_v28 = vsel %vm195_vm2, %v1511_v18, 0.0  ;;  %v1516_v30 = vsel %vm195_vm2, %v1512_v19, 0.0  ;;  %v1518_v37 = vsel %vm195_vm2, %v1513_v20, 0.0 }
 0x369   :  { %v1517_v33 = vadd.f32 %v1516_v30, %v1515_v28  ;;  %v1520_v38 = vsel %vm195_vm2, %v1514_v25, 0.0 }
 0x36a   :  { %v1462_v35 = vrot.slane %v1461_v23, 4 }
 0x36b   :  { %v1519_v39 = vadd.f32 %v1518_v37, %v1517_v33 }
 0x36c   :  { %v1463_v41 = vadd.f32 %v1462_v35, %v1461_v23 }
 0x36d   :  { %v1521_v40 = vadd.f32 %v1520_v38, %v1519_v39 }
 0x36e   :  { %v1464_v42 = vrot.slane %v1463_v41, 2 }
 0x36f   :  { %v1522_v43 = vrot.slane %v1521_v40, 4 }
 0x370   :  { %v1465_v44 = vadd.f32 %v1464_v42, %v1463_v41 }
 0x371   :  { %v1523_v45 = vadd.f32 %v1522_v43, %v1521_v40 }
 0x372   :  { %v1466_v22 = vrot.slane %v1465_v44, 1  ;;  %3440 = vmatmul.mubr.msk.bf16.vlgmr.msra.gmra.mrb[8].mxu1 %vm195_vm2, %v914_v31 }
 0x373   :  { %v1524_v46 = vrot.slane %v1523_v45, 2 }
 0x374   :  { %v1467_v47 = vadd.f32 %v1466_v22, %v1465_v44 }
 0x375   :  { %v1525_v49 = vadd.f32 %v1524_v46, %v1523_v45 }
 0x376   :  { %v1468_v51 = vmul.f32 0.03125, %v1467_v47 }
 0x377   :  { %v1526_v54 = vrot.slane %v1525_v49, 1 }
 0x378   :  { %v1469_v55 = vadd.f32 1e-05, %v1468_v51 }
 0x379   :  { %v1527_v57 = vadd.f32 %v1526_v54, %v1525_v49 }
 0x37a   :  { %3730 = vrsqrt.f32 %v1469_v55 }
 0x37b   :  { %v1528_v58 = vmul.f32 0.03125, %v1527_v57 }
 0x37d   :  { %v1529_v60 = vadd.f32 1e-05, %v1528_v58 }
 0x37f   :  { %3732 = vrsqrt.f32 %v1529_v60 }
 0x384   :  { %v3731_v1 = vpop.eup %3730 }
 0x385   :  { %v1471_v29 = vmul.f32 %v3731_v1, %v4236_v27 }
 0x387   :  { %v1475_v31 = vrot.slane %v1471_v29, %v4231_v62  ;;  %v1480_v3 = vmul.f32 %v1471_v29, %v1446_v56 }
 0x389   :  { %v3733_v7 = vpop.eup %3732  ;;  %v4244_v9 = vmul.f32 %v1475_v31, %v4125_v59  ;;  %v4247_v32 = vrot.slane %v1480_v3, %v4231_v62  ;;  %v4250_v34 = vmul.f32 %v1475_v31, %v4129_v61  ;;  %v4253_v36 = vmul.f32 %v1475_v31, %v4152_v10 }
 0x38a   :  { %v1531_v8 = vmul.f32 %v3733_v7, %v4236_v27  ;;  %v4257_v56 = vmul.f32 %v1475_v31, %v4158_v13 }
 0x38b   :  { %v1486_v14 = vsub.f32 %v4244_v9, %v4247_v32  ;;  %v1485_v59 = vsub.f32 %v4250_v34, %v4247_v32  ;;  %v1488_v11 = vsub.f32 %v4253_v36, %v4247_v32  ;;  %v3713_v36 = vld [vmem:[%s4761_s13] sm:$0xff]  }
 0x38c   :  { %v1535_v61 = vrot.slane %v1531_v8, %v4241_v4  ;;  %v1540_v12 = vmul.f32 %v1531_v8, %v4203_v6  ;;  %v1487_v10 = vsub.f32 %v4257_v56, %v4247_v32 }
 0x38e   :  { %v4270_v15 = vmul.f32 %v1535_v61, %v4134_v0  ;;  %v4273_v13 = vrot.slane %v1540_v12, %v4241_v4  ;;  %v4276_v16 = vmul.f32 %v1535_v61, %v4142_v5  ;;  %v4279_v17 = vmul.f32 %v1535_v61, %v4173_v24 }
 0x38f   :  { %v4282_v18 = vmul.f32 %v1535_v61, %v4177_v26 }
 0x390   :  { %v1546_v6 = vsub.f32 %v4270_v15, %v4273_v13  ;;  %v1545_v19 = vsub.f32 %v4276_v16, %v4273_v13  ;;  %v1548_v0 = vsub.f32 %v4279_v17, %v4273_v13 }
 0x391   :  { %v1547_v20 = vsub.f32 %v4282_v18, %v4273_v13 }
 0x445   :  { %v4292_v5 = vpop.f32.mrb[8].mxu1 }
 0x446   :  { %v4294_v24 = vpop.f32.mrb[9].mxu1  ;;  %v1278_v37 = vsel %vm195_vm2, %v4292_v5, 0.0  ;;  %v1343_v39 = vsel %vm1339_vm4, %v4292_v5, 0.0 }
 0x447   :  { %v4296_v21 = vpop.f32.mrb[10].mxu1  ;;  %v1275_v23 = vsel %vm195_vm2, %v4294_v24, 0.0  ;;  %v1340_v25 = vsel %vm1339_vm4, %v4294_v24, 0.0 }
 0x448   :  { %v4298_v26 = vpop.f32.mrb[11].mxu1  ;;  %v1280_v40 = vsel %vm195_vm2, %v4296_v21, 0.0  ;;  %v1345_v42 = vsel %vm1339_vm4, %v4296_v21, 0.0 }
 0x449   :  { %v1276_v28 = vsel %vm195_vm2, %v4298_v26, 0.0  ;;  %v1341_v30 = vsel %vm1339_vm4, %v4298_v26, 0.0 }
 0x44a   :  { %v1277_v33 = vadd.f32 %v1276_v28, %v1275_v23  ;;  %v1342_v35 = vadd.f32 %v1341_v30, %v1340_v25 }
 0x44c   :  { %v1279_v41 = vadd.f32 %v1278_v37, %v1277_v33  ;;  %v1344_v38 = vadd.f32 %v1343_v39, %v1342_v35 }
 0x44e   :  { %v1281_v43 = vadd.f32 %v1280_v40, %v1279_v41  ;;  %v1346_v44 = vadd.f32 %v1345_v42, %v1344_v38 }
 0x450   :  { %v1282_v45 = vrot.slane %v1281_v43, 4  ;;  %v1347_v22 = vrot.slane %v1346_v44, 4 }
 0x452   :  { %v1283_v46 = vadd.f32 %v1282_v45, %v1281_v43  ;;  %v1348_v47 = vadd.f32 %v1347_v22, %v1346_v44 }
 0x454   :  { %v1284_v49 = vrot.slane %v1283_v46, 2  ;;  %v1349_v51 = vrot.slane %v1348_v47, 2 }
 0x456   :  { %v1285_v54 = vadd.f32 %v1284_v49, %v1283_v46  ;;  %v1350_v55 = vadd.f32 %v1349_v51, %v1348_v47 }
 0x458   :  { %v1286_v57 = vrot.slane %v1285_v54, 1  ;;  %v1351_v58 = vrot.slane %v1350_v55, 1 }
 0x45a   :  { %v1287_v60 = vadd.f32 %v1286_v57, %v1285_v54  ;;  %v1352_v1 = vadd.f32 %v1351_v58, %v1350_v55 }
 0x45c   :  { %v1288_v29 = vmul.f32 0.03125, %v1287_v60  ;;  %v4316_v31 = vmul.f32 0.03125, %v1352_v1 }
 0x45e   :  { %v1289_v3 = vsub.f32 %v4294_v24, %v1288_v29  ;;  %v1290_v7 = vsub.f32 %v4298_v26, %v1288_v29  ;;  %v1291_v8 = vsub.f32 %v4292_v5, %v1288_v29  ;;  %v1292_v61 = vsub.f32 %v4296_v21, %v1288_v29 }
 0x45f   :  { %v1354_v12 = vsub.f32 %v4294_v24, %v4316_v31  ;;  %v1355_v23 = vsub.f32 %v4298_v26, %v4316_v31  ;;  %v1356_v25 = vsub.f32 %v4292_v5, %v4316_v31  ;;  %v1357_v28 = vsub.f32 %v4296_v21, %v4316_v31 }
 0x460   :  { %v1293_v30 = vmul.f32 %v1289_v3, %v1289_v3  ;;  %v1294_v33 = vmul.f32 %v1290_v7, %v1290_v7  ;;  %v1295_v35 = vmul.f32 %v1291_v8, %v1291_v8  ;;  %v1296_v38 = vmul.f32 %v1292_v61, %v1292_v61 }
 0x461   :  { %v1358_v37 = vmul.f32 %v1354_v12, %v1354_v12  ;;  %v1359_v39 = vmul.f32 %v1355_v23, %v1355_v23  ;;  %v1360_v41 = vmul.f32 %v1356_v25, %v1356_v25  ;;  %v1361_v22 = vmul.f32 %v1357_v28, %v1357_v28 }
 0x462   :  { %v1297_v40 = vsel %vm195_vm2, %v1293_v30, 0.0  ;;  %v1298_v42 = vsel %vm195_vm2, %v1294_v33, 0.0  ;;  %v1300_v46 = vsel %vm195_vm2, %v1295_v35, 0.0  ;;  %v1302_v54 = vsel %vm195_vm2, %v1296_v38, 0.0 }
 0x463   :  { %v1299_v43 = vadd.f32 %v1298_v42, %v1297_v40  ;;  %v1362_v44 = vsel %vm1339_vm4, %v1358_v37, 0.0  ;;  %v1363_v45 = vsel %vm1339_vm4, %v1359_v39, 0.0  ;;  %v1365_v51 = vsel %vm1339_vm4, %v1360_v41, 0.0 }
 0x464   :  { %v1364_v47 = vadd.f32 %v1363_v45, %v1362_v44  ;;  %v1367_v58 = vsel %vm1339_vm4, %v1361_v22, 0.0  ;;  %v4339_v40 = vsub.s32 1, %v3979_v48 }
 0x465   :  { %v1301_v49 = vadd.f32 %v1300_v46, %v1299_v43  ;;  %v1270_v46 = vrot.slane %v4236_v27, %v3985_v50 }
 0x466   :  { %v1366_v55 = vadd.f32 %v1365_v51, %v1364_v47 }
 0x467   :  { %v1303_v57 = vadd.f32 %v1302_v54, %v1301_v49 }
 0x468   :  { %v1368_v60 = vadd.f32 %v1367_v58, %v1366_v55 }
 0x469   :  { %v1304_v1 = vrot.slane %v1303_v57, 4 }
 0x46a   :  { %v1369_v3 = vrot.slane %v1368_v60, 4 }
 0x46b   :  { %v1305_v7 = vadd.f32 %v1304_v1, %v1303_v57  ;;  %v1272_v1 = vmul.f32 %v4112_v52, %v1270_v46 }
 0x46c   :  { %v1370_v8 = vadd.f32 %v1369_v3, %v1368_v60 }
 0x46d   :  { %v1306_v61 = vrot.slane %v1305_v7, 2 }
 0x46e   :  { %v1371_v12 = vrot.slane %v1370_v8, 2 }
 0x46f   :  { %v1307_v23 = vadd.f32 %v1306_v61, %v1305_v7  ;;  %v1274_v61 = vmul.f32 %v4132_v63, %v1270_v46 }
 0x470   :  { %v1372_v25 = vadd.f32 %v1371_v12, %v1370_v8 }
 0x471   :  { %v1308_v28 = vrot.slane %v1307_v23, 1 }
 0x472   :  { %v1373_v30 = vrot.slane %v1372_v25, 1 }
 0x473   :  { %v1309_v33 = vadd.f32 %v1308_v28, %v1307_v23  ;;  %v1273_v23 = vmul.f32 %v1270_v46, %v4138_v2 }
 0x474   :  { %v1374_v35 = vadd.f32 %v1373_v30, %v1372_v25 }
 0x475   :  { %v1310_v37 = vmul.f32 0.03125, %v1309_v33 }
 0x476   :  { %v1375_v39 = vmul.f32 0.03125, %v1374_v35 }
 0x477   :  { %v1311_v41 = vadd.f32 1e-05, %v1310_v37  ;;  %v1385_v37 = vsub.s32 2, %v3979_v48  ;;  %v3725_v48 = vld [vmem:[%s4767_s19 + $0x8] sm:$0xff]  }
 0x478   :  { %v1376_v38 = vadd.f32 1e-05, %v1375_v39 }
 0x479   :  { %3734 = vrsqrt.f32 %v1311_v41 }
 0x47a   :  { %3736 = vrsqrt.f32 %v1376_v38 }
 0x483   :  { %v3735_v42 = vpop.eup %3734 }
 0x484   :  { %v3737_v43 = vpop.eup %3736  ;;  %v1313_v44 = vmul.f32 %v3735_v42, %v4236_v27 }
 0x485   :  { %1379 = vrot.lane.b32.xlu0 %v3737_v43, %s3804_s1 }
 0x486   :  { %v1317_v45 = vrot.slane %v1313_v44, %v4339_v40  ;;  %v1322_v22 = vmul.f32 %v1313_v44, %v1288_v29  ;;  %v1271_v29 = vmul.f32 %v1270_v46, %v4115_v53 }
 0x488   :  { %v1319_v47 = vmul.f32 %v1317_v45, %v4298_v26  ;;  %v1326_v49 = vrot.slane %v1322_v22, %v4339_v40  ;;  %v1318_v51 = vmul.f32 %v1317_v45, %v4294_v24  ;;  %v1321_v54 = vmul.f32 %v4296_v21, %v1317_v45 }
 0x489   :  { %v1320_v55 = vmul.f32 %v4292_v5, %v1317_v45 }
 0x48a   :  { %v1328_v57 = vsub.f32 %v1319_v47, %v1326_v49  ;;  %v1327_v58 = vsub.f32 %v1318_v51, %v1326_v49  ;;  %v1330_v60 = vsub.f32 %v1321_v54, %v1326_v49  ;;  %v3712_v47 = vld [vmem:[%s4801_s3] sm:$0xff]  }
 0x48b   :  { %v1329_v3 = vsub.f32 %v1320_v55, %v1326_v49  ;;  %3443 = vmatprep.subr.bf16.mxu0 %v3712_v47 }
 0x48c   :  { %v1332_v7 = vmax.f32 %v1328_v57, 0.0  ;;  %v1331_v8 = vmax.f32 %v1327_v58, 0.0  ;;  %v1334_v12 = vmax.f32 %v1330_v60, 0.0  ;;  %3444 = vmatpush3.bf16.msra.mxu0 %v3712_v47 }
 0x48d   :  { %v1333_v25 = vmax.f32 %v1329_v3, 0.0  ;;  %3449 = vmatprep.subr.bf16.mxu0 %v3713_v36 }
 0x48e   :  { %v1336_v28 = vadd.f32 %v1332_v7, %v1272_v1  ;;  %v1335_v30 = vadd.f32 %v1331_v8, %v1271_v29  ;;  %v1338_v33 = vadd.f32 %v1334_v12, %v1274_v61 }
 0x48f   :  { %v1337_v35 = vadd.f32 %v1333_v25, %v1273_v23 }
 0x4f7   :  { %v1380_v39 = vpop.permute.xlu0 %1379 }
 0x4f8   :  { %v1382_v52 = vmul.f32 %v1380_v39, %v4236_v27 }
 0x4fa   :  { %v1396_v41 = vrot.slane %v1382_v52, 2  ;;  %v1386_v53 = vrot.slane %v1382_v52, %v1385_v37 }
 0x4fc   :  { %1397 = vrot.lane.b32.xlu0 %v1396_v41, %s3805_s6  ;;  %1388 = vrot.lane.b32.xlu1 %v1386_v53, %s3805_s6  ;;  %s3809_s6 = smov 32  }
 0x56e   :  { %v1398_v63 = vpop.permute.xlu0 %1397  ;;  %v1389_v38 = vpop.permute.xlu1 %1388 }
 0x56f   :  { %v1400_v2 = vmul.f32 %v1398_v63, %v4316_v31  ;;  %v1391_v43 = vmul.f32 %v1389_v38, %v4294_v24  ;;  %v1392_v44 = vmul.f32 %v1389_v38, %v4298_v26  ;;  %v1393_v45 = vmul.f32 %v4292_v5, %v1389_v38 }
 0x570   :  { %v1394_v27 = vmul.f32 %v4296_v21, %v1389_v38 }
 0x571   :  { %v1404_v42 = vrot.slane %v1400_v2, %v3985_v50 }
 0x573   :  { %v1406_v22 = vsub.f32 %v1392_v44, %v1404_v42  ;;  %v1405_v46 = vsub.f32 %v1391_v43, %v1404_v42  ;;  %v1408_v54 = vsub.f32 %v1394_v27, %v1404_v42  ;;  %v1407_v31 = vsub.f32 %v1393_v45, %v1404_v42 }
 0x575   :  { %v1410_v49 = vmax.f32 %v1406_v22, 0.0  ;;  %v1409_v51 = vmax.f32 %v1405_v46, 0.0  ;;  %v1412_v24 = vmax.f32 %v1408_v54, 0.0  ;;  %v1411_v5 = vmax.f32 %v1407_v31, 0.0 }
 0x577   :  { %1419 = vrot.lane.b32.xlu0 %v1410_v49, %s3804_s1  ;;  %1417 = vrot.lane.b32.xlu1 %v1409_v51, %s3804_s1 }
 0x57b   :  { %1423 = vrot.lane.b32.xlu0 %v1412_v24, %s3804_s1  ;;  %1421 = vrot.lane.b32.xlu1 %v1411_v5, %s3804_s1 }
 0x5e9   :  { %v1420_v21 = vpop.permute.xlu0 %1419  ;;  %v1418_v26 = vpop.permute.xlu1 %1417 }
 0x5ea   :  { %v1430_v55 = vadd.f32 %v1420_v21, %v1336_v28  ;;  %v1429_v57 = vadd.f32 %v1418_v26, %v1335_v30 }
 0x5ec   :  { %v1490_v58 = vadd.f32 %v1486_v14, %v1430_v55  ;;  %v1489_v60 = vadd.f32 %v1485_v59, %v1429_v57  ;;  %v1656_v55 = vld [vmem:[%s4802_s8] sm:$0x1] }
 0x5ed   :  { %v1424_v1 = vpop.permute.xlu0 %1423  ;;  %v1422_v29 = vpop.permute.xlu1 %1421 }
 0x5ee   :  { %v1550_v3 = vadd.f32 %v1546_v6, %v1490_v58  ;;  %v1549_v7 = vadd.f32 %v1545_v19, %v1489_v60  ;;  %v1432_v8 = vadd.f32 %v1424_v1, %v1338_v33  ;;  %v1431_v61 = vadd.f32 %v1422_v29, %v1337_v35  ;;  %v1658_v60 = vld [vmem:[%s4760_s12] sm:$0x1] }
 0x5f0   :  { %v1553_v12 = vpack.c.bf16 %v1550_v3, %v1549_v7  ;;  %v1492_v9 = vadd.f32 %v1488_v11, %v1432_v8  ;;  %v1491_v34 = vadd.f32 %v1487_v10, %v1431_v61 }
 0x5f2   :  { %v1552_v14 = vadd.f32 %v1548_v0, %v1492_v9  ;;  %v1551_v59 = vadd.f32 %v1547_v20, %v1491_v34  ;;  %3445 = vmatprep.mubr.msk.bf16.mxu0 %vm195_vm2, %v1553_v12 }
 0x5f4   :  { %v1554_v15 = vpack.c.bf16 %v1552_v14, %v1551_v59 }
 0x5f6   :  { %3446 = vmatmul.mubr.msk.bf16.vlgmr.msra.gmra.mrb[20].mxu0 %vm195_vm2, %v1554_v15 }
 0x5f7   :  { %3450 = vmatpush3.bf16.msra.mxu0 %v3713_v36 }
 0x6c9   :  { %v3447_v32 = vpop.f32.mrb[20].mxu0 }
 0x6ca   :  { %v1603_v56 = vpop.f32.mrb[21].mxu0  ;;  %v1621_v18 = vsel %vm195_vm2, %v3447_v32, 0.0 }
 0x6cb   :  { %v3448_v11 = vpop.f32.mrb[22].mxu0  ;;  %v1618_v16 = vsel %vm195_vm2, %v1603_v56, 0.0 }
 0x6cc   :  { %v1606_v10 = vpop.f32.mrb[23].mxu0  ;;  %v1623_v19 = vsel %vm195_vm2, %v3448_v11, 0.0 }
 0x6cd   :  { %v1619_v13 = vsel %vm195_vm2, %v1606_v10, 0.0 }
 0x6ce   :  { %v1620_v17 = vadd.f32 %v1619_v13, %v1618_v16 }
 0x6d0   :  { %v1622_v6 = vadd.f32 %v1621_v18, %v1620_v17 }
 0x6d2   :  { %v1624_v0 = vadd.f32 %v1623_v19, %v1622_v6 }
 0x6d4   :  { %v1625_v20 = vrot.slane %v1624_v0, 4 }
 0x6d6   :  { %v1626_v23 = vadd.f32 %v1625_v20, %v1624_v0 }
 0x6d8   :  { %v1627_v25 = vrot.slane %v1626_v23, 2 }
 0x6da   :  { %v1628_v28 = vadd.f32 %v1627_v25, %v1626_v23 }
 0x6dc   :  { %v1629_v30 = vrot.slane %v1628_v28, 1 }
 0x6de   :  { %v1630_v33 = vadd.f32 %v1629_v30, %v1628_v28 }
 0x6e0   :  { %v1631_v35 = vmul.f32 0.03125, %v1630_v33 }
 0x6e2   :  { %v1632_v39 = vsub.f32 %v1603_v56, %v1631_v35  ;;  %v1633_v52 = vsub.f32 %v1606_v10, %v1631_v35  ;;  %v1634_v41 = vsub.f32 %v3447_v32, %v1631_v35  ;;  %v1635_v53 = vsub.f32 %v3448_v11, %v1631_v35 }
 0x6e4   :  { %v1636_v63 = vmul.f32 %v1632_v39, %v1632_v39  ;;  %v1637_v38 = vmul.f32 %v1633_v52, %v1633_v52  ;;  %v1638_v2 = vmul.f32 %v1634_v41, %v1634_v41  ;;  %v1639_v42 = vmul.f32 %v1635_v53, %v1635_v53 }
 0x6e6   :  { %v1640_v43 = vsel %vm195_vm2, %v1636_v63, 0.0  ;;  %v1641_v44 = vsel %vm195_vm2, %v1637_v38, 0.0  ;;  %v1643_v27 = vsel %vm195_vm2, %v1638_v2, 0.0  ;;  %v1645_v46 = vsel %vm195_vm2, %v1639_v42, 0.0 }
 0x6e7   :  { %v1642_v45 = vadd.f32 %v1641_v44, %v1640_v43 }
 0x6e9   :  { %v1644_v22 = vadd.f32 %v1643_v27, %v1642_v45 }
 0x6eb   :  { %v1646_v47 = vadd.f32 %v1645_v46, %v1644_v22 }
 0x6ed   :  { %v1647_v49 = vrot.slane %v1646_v47, 4 }
 0x6ef   :  { %v1648_v51 = vadd.f32 %v1647_v49, %v1646_v47 }
 0x6f1   :  { %v1649_v54 = vrot.slane %v1648_v51, 2 }
 0x6f3   :  { %v1650_v31 = vadd.f32 %v1649_v54, %v1648_v51 }
 0x6f5   :  { %v1651_v24 = vrot.slane %v1650_v31, 1 }
 0x6f7   :  { %v1652_v5 = vadd.f32 %v1651_v24, %v1650_v31 }
 0x6f9   :  { %v1653_v21 = vmul.f32 0.03125, %v1652_v5 }
 0x6fb   :  { %v1654_v26 = vadd.f32 1e-05, %v1653_v21 }
 0x6fd   :  { %3738 = vrsqrt.f32 %v1654_v26 }
 0x707   :  { %v3739_v57 = vpop.eup %3738 }
 0x708   :  { %v1657_v58 = vmul.f32 %v3739_v57, %v1656_v55 }
 0x70a   :  { %v1659_v1 = vmul.f32 %v1657_v58, %v1631_v35  ;;  %v1665_v29 = vrot.slane %v1657_v58, %v3985_v50 }
 0x70c   :  { %v1660_v3 = vsub.f32 %v1658_v60, %v1659_v1  ;;  %v1668_v7 = vmul.f32 %v1665_v29, %v1606_v10  ;;  %v1667_v8 = vmul.f32 %v1665_v29, %v1603_v56  ;;  %v1669_v61 = vmul.f32 %v3447_v32, %v1665_v29  ;;  %v1817_v32 = vld [vmem:[%s4764_s16] sm:$0xff]  ;;  %v3159_v56 = vld [vmem:[%s4764_s16 + $0x30] sm:$0xff] }
 0x70d   :  { %v1670_v12 = vmul.f32 %v3448_v11, %v1665_v29  ;;  %3496 = vmatprep.mubr.msk.f32.mxu1 %vm399_vm3, %v3159_v56 }
 0x70e   :  { %v1675_v9 = vrot.slane %v1660_v3, %v3985_v50 }
 0x710   :  { %v1678_v34 = vadd.f32 %v1675_v9, %v1668_v7  ;;  %v1677_v14 = vadd.f32 %v1675_v9, %v1667_v8  ;;  %v1679_v59 = vadd.f32 %v1675_v9, %v1669_v61  ;;  %v1680_v15 = vadd.f32 %v1675_v9, %v1670_v12  ;;  %v1788_v7 = vld [vmem:[%s4762_s14] sm:$0x1] }
 0x711   :  { %v1790_v12 = vld [vmem:[%s4763_s15] sm:$0x1] }
 0x712   :  { %v1682_v36 = vmax.f32 %v1678_v34, 0.0  ;;  %v1681_v16 = vmax.f32 %v1677_v14, 0.0  ;;  %v1683_v13 = vmax.f32 %v1679_v59, 0.0  ;;  %v1684_v17 = vmax.f32 %v1680_v15, 0.0 }
 0x714   :  { %v1685_v18 = vpack.c.bf16 %v1682_v36, %v1681_v16  ;;  %v1686_v6 = vpack.c.bf16 %v1684_v17, %v1683_v13 }
 0x716   :  { %3451 = vmatprep.mubr.msk.bf16.mxu0 %vm195_vm2, %v1685_v18 }
 0x717   :  { %3452 = vmatmul.mubr.msk.bf16.vlgmr.msra.gmra.mrb[24].mxu0 %vm195_vm2, %v1686_v6 }
 0x718   :  { %3463 = vmatprep.mubr.msk.f32.mxu0 %vm399_vm3, %v1817_v32 }
 0x7ea   :  { %v3453_v11 = vpop.f32.mrb[24].mxu0 }
 0x7eb   :  { %v1735_v10 = vpop.f32.mrb[25].mxu0  ;;  %v1753_v28 = vsel %vm399_vm3, %v3453_v11, 0.0 }
 0x7ec   :  { %v3454_v19 = vpop.f32.mrb[26].mxu0  ;;  %v1750_v20 = vsel %vm399_vm3, %v1735_v10, 0.0 }
 0x7ed   :  { %v1738_v0 = vpop.f32.mrb[27].mxu0  ;;  %v1755_v33 = vsel %vm399_vm3, %v3454_v19, 0.0 }
 0x7ee   :  { %v1751_v23 = vsel %vm399_vm3, %v1738_v0, 0.0 }
 0x7ef   :  { %v1752_v25 = vadd.f32 %v1751_v23, %v1750_v20 }
 0x7f1   :  { %v1754_v30 = vadd.f32 %v1753_v28, %v1752_v25 }
 0x7f3   :  { %v1756_v35 = vadd.f32 %v1755_v33, %v1754_v30  ;;  %v3155_v33 = vld [vmem:[%s4764_s16 + $0x20] sm:$0xff] }
 0x7f5   :  { %v1757_v39 = vrot.slane %v1756_v35, 4 }
 0x7f7   :  { %v1758_v52 = vadd.f32 %v1757_v39, %v1756_v35  ;;  %v3156_v35 = vld [vmem:[%s4764_s16 + $0x28] sm:$0xff]  ;;  %v3163_v39 = vld [vmem:[%s4764_s16 + $0x40] sm:$0xff] }
 0x7f9   :  { %v1759_v41 = vrot.slane %v1758_v52, 2 }
 0x7fb   :  { %v1760_v53 = vadd.f32 %v1759_v41, %v1758_v52  ;;  %v3164_v52 = vld [vmem:[%s4764_s16 + $0x48] sm:$0xff]  ;;  %v3714_v41 = vld [vmem:[%s4765_s17 + $0x10] sm:$0xff]  }
 0x7fd   :  { %v1761_v63 = vrot.slane %v1760_v53, 1 }
 0x7ff   :  { %v1762_v38 = vadd.f32 %v1761_v63, %v1760_v53  ;;  %v3806_v53 = vmov 0.0   ;;  %v3715_v63 = vld [vmem:[%s4765_s17 + $0x18] sm:$0xff]  }
 0x801   :  { %v1763_v2 = vmul.f32 0.03125, %v1762_v38 }
 0x803   :  { %v1764_v42 = vsub.f32 %v1735_v10, %v1763_v2  ;;  %v1765_v43 = vsub.f32 %v1738_v0, %v1763_v2  ;;  %v1766_v44 = vsub.f32 %v3453_v11, %v1763_v2  ;;  %v1767_v45 = vsub.f32 %v3454_v19, %v1763_v2 }
 0x805   :  { %v1768_v27 = vmul.f32 %v1764_v42, %v1764_v42  ;;  %v1769_v22 = vmul.f32 %v1765_v43, %v1765_v43  ;;  %v1770_v46 = vmul.f32 %v1766_v44, %v1766_v44  ;;  %v1771_v47 = vmul.f32 %v1767_v45, %v1767_v45 }
 0x807   :  { %v1772_v49 = vsel %vm399_vm3, %v1768_v27, 0.0  ;;  %v1773_v51 = vsel %vm399_vm3, %v1769_v22, 0.0  ;;  %v1775_v31 = vsel %vm399_vm3, %v1770_v46, 0.0  ;;  %v1777_v5 = vsel %vm399_vm3, %v1771_v47, 0.0  ;;  %v3716_v46 = vld [vmem:[%s4765_s17] sm:$0xff]  }
 0x808   :  { %v1774_v54 = vadd.f32 %v1773_v51, %v1772_v49  ;;  %v3717_v49 = vld [vmem:[%s4765_s17 + $0x8] sm:$0xff]  }
 0x80a   :  { %v1776_v24 = vadd.f32 %v1775_v31, %v1774_v54 }
 0x80c   :  { %v1778_v21 = vadd.f32 %v1777_v5, %v1776_v24 }
 0x80e   :  { %v1779_v26 = vrot.slane %v1778_v21, 4 }
 0x810   :  { %v1780_v55 = vadd.f32 %v1779_v26, %v1778_v21 }
 0x812   :  { %v1781_v57 = vrot.slane %v1780_v55, 2 }
 0x814   :  { %v1782_v58 = vadd.f32 %v1781_v57, %v1780_v55 }
 0x816   :  { %v1783_v60 = vrot.slane %v1782_v58, 1 }
 0x818   :  { %v1784_v1 = vadd.f32 %v1783_v60, %v1782_v58 }
 0x81a   :  { %v1785_v29 = vmul.f32 0.03125, %v1784_v1 }
 0x81c   :  { %v1786_v3 = vadd.f32 1e-05, %v1785_v29 }
 0x81e   :  { %3740 = vrsqrt.f32 %v1786_v3  ;;  %v3718_v3 = vld [vmem:[%s4765_s17 + $0x20] sm:$0xff]  }
 0x828   :  { %v3741_v8 = vpop.eup %3740 }
 0x829   :  { %v1789_v61 = vmul.f32 %v3741_v8, %v1788_v7 }
 0x82b   :  { %v1791_v9 = vmul.f32 %v1789_v61, %v1763_v2  ;;  %v1797_v34 = vrot.slane %v1789_v61, %v3985_v50 }
 0x82d   :  { %v1792_v14 = vsub.f32 %v1790_v12, %v1791_v9  ;;  %v1799_v59 = vmul.f32 %v1797_v34, %v1735_v10  ;;  %v1800_v15 = vmul.f32 %v1797_v34, %v1738_v0  ;;  %v1801_v36 = vmul.f32 %v3453_v11, %v1797_v34  ;;  %v1818_v11 = vld [vmem:[%s4764_s16 + $0x8] sm:$0xff]  ;;  %v3160_v10 = vld [vmem:[%s4764_s16 + $0x38] sm:$0xff] }
 0x82e   :  { %v1802_v16 = vmul.f32 %v3454_v19, %v1797_v34  ;;  %v3151_v19 = vld [vmem:[%s4764_s16 + $0x10] sm:$0xff]  ;;  %v3152_v0 = vld [vmem:[%s4764_s16 + $0x18] sm:$0xff] }
 0x82f   :  { %v1807_v13 = vrot.slane %v1792_v14, %v3985_v50 }
 0x831   :  { %v1809_v17 = vadd.f32 %v1807_v13, %v1799_v59  ;;  %v1810_v18 = vadd.f32 %v1807_v13, %v1800_v15  ;;  %v1811_v6 = vadd.f32 %v1807_v13, %v1801_v36  ;;  %v1812_v32 = vadd.f32 %v1807_v13, %v1802_v16  ;;  %v3719_v15 = vld [vmem:[%s4765_s17 + $0x28] sm:$0xff]  }
 0x833   :  { %v1813_v56 = vmax.f32 %v1809_v17, 0.0  ;;  %v1814_v20 = vmax.f32 %v1810_v18, 0.0  ;;  %v1815_v23 = vmax.f32 %v1811_v6, 0.0  ;;  %v1816_v25 = vmax.f32 %v1812_v32, 0.0 }
 0x835   :  { %v3616_v28 = vpack.c.bf16 %v1814_v20, %v1813_v56  ;;  %v3620_v30 = vpack.c.bf16 %v1816_v25, %v1815_v23  ;;  %v3720_v25 = vld [vmem:[%s4765_s17 + $0x30] sm:$0xff]  }
 0x837   :  { %3617 = vmatprep.subr.bf16.mxu0 %v3616_v28  ;;  %3641 = vmatprep.subr.bf16.mxu1 %v3616_v28 }
 0x838   :  { %3619 = vmatpush3.bf16.msra.mxu0 %v3616_v28  ;;  %3643 = vmatpush3.bf16.msra.mxu1 %v3616_v28 }
 0x839   :  { %3621 = vmatprep.subr.bf16.mxu0 %v3620_v30  ;;  %3645 = vmatprep.subr.bf16.mxu1 %v3620_v30 }
 0x83c   :  { %3623 = vmatpush3.bf16.msra.mxu0 %v3620_v30  ;;  %3647 = vmatpush3.bf16.msra.mxu1 %v3620_v30 }
 0x83d   :  { %3625 = vmatprep.subr.bf16.mxu0 %v3616_v28  ;;  %3510 = vmatprep.subr.bf16.mxu1 %v3806_v53 }
 0x83f   :  { %3464 = vmatmul.mubr.msk.f32.vlgmr.msra.gmra.mrb[28].mxu0 %vm399_vm3, %v1818_v11  ;;  %3497 = vmatmul.mubr.msk.f32.vlgmr.msra.gmra.mrb[12].mxu1 %vm399_vm3, %v3160_v10 }
 0x840   :  { %3627 = vmatpush3.bf16.msra.mxu0 %v3616_v28  ;;  %3474 = vmatprep.mubr.msk.f32.mxu0 %vm399_vm3, %v3151_v19  ;;  %v3721_v19 = vld [vmem:[%s4765_s17 + $0x38] sm:$0xff]  }
 0x841   :  { %3629 = vmatprep.subr.bf16.mxu0 %v3620_v30  ;;  %3511 = vmatpush3.bf16.msra.mxu1 %v3714_v41 }
 0x842   :  { %3512 = vmatprep.subr.bf16.mxu1 %v3806_v53  ;;  %3514 = vmatprep.mubr.msk.bf16.mxu1 %vm3807_vm5, %v3806_v53 }
 0x844   :  { %3631 = vmatpush3.bf16.msra.mxu0 %v3620_v30 }
 0x845   :  { %3633 = vmatprep.subr.bf16.mxu0 %v3616_v28  ;;  %3513 = vmatpush3.bf16.msra.mxu1 %v3715_v63 }
 0x846   :  { %3518 = vmatprep.subr.bf16.mxu1 %v3806_v53 }
 0x847   :  { %3475 = vmatmul.mubr.msk.f32.vlgmr.msra.gmra.mrb[30].mxu0 %vm399_vm3, %v3152_v0 }
 0x848   :  { %3635 = vmatpush3.bf16.msra.mxu0 %v3616_v28  ;;  %3485 = vmatprep.mubr.msk.f32.mxu0 %vm399_vm3, %v3155_v33 }
 0x849   :  { %3637 = vmatprep.subr.bf16.mxu0 %v3620_v30 }
 0x84c   :  { %3639 = vmatpush3.bf16.msra.mxu0 %v3620_v30 }
 0x84d   :  { %3649 = vmatprep.subr.bf16.mxu0 %v3616_v28 }
 0x84f   :  { %3486 = vmatmul.mubr.msk.f32.vlgmr.msra.gmra.mrb[32].mxu0 %vm399_vm3, %v3156_v35 }
 0x850   :  { %3651 = vmatpush3.bf16.msra.mxu0 %v3616_v28  ;;  %3507 = vmatprep.mubr.msk.f32.mxu0 %vm399_vm3, %v3163_v39 }
 0x851   :  { %3653 = vmatprep.subr.bf16.mxu0 %v3620_v30 }
 0x854   :  { %3655 = vmatpush3.bf16.msra.mxu0 %v3620_v30 }
 0x855   :  { %3550 = vmatprep.subr.bf16.mxu0 %v3806_v53 }
 0x857   :  { %3508 = vmatmul.mubr.msk.f32.vlgmr.msra.gmra.mrb[34].mxu0 %vm399_vm3, %v3164_v52 }
 0x858   :  { %3554 = vmatprep.mubr.msk.bf16.mxu0 %vm3807_vm5, %v3806_v53 }
 0x912   :  { %v3465_v38 = vpop.f32.mrb[28].mxu0  ;;  %v4489_v2 = vpop.f32.mrb[12].mxu1 }
 0x913   :  { %v1891_v42 = vpop.f32.mrb[29].mxu0  ;;  %v4491_v43 = vpop.f32.mrb[13].mxu1 }
 0x914   :  { %v2236_v44 = vpack.c.bf16 %v3465_v38, %v1891_v42  ;;  %v2239_v45 = vpack.c.bf16 %v4489_v2, %v4491_v43 }
 0x91a   :  { %v3476_v27 = vpop.f32.mrb[30].mxu0 }
 0x91b   :  { %v1975_v22 = vpop.f32.mrb[31].mxu0 }
 0x91c   :  { %v2237_v47 = vpack.c.bf16 %v3476_v27, %v1975_v22 }
 0x91e   :  { %3515 = vmatmul.mubr.msk.bf16.vlgmr.msra.gmra.mrb[16].mxu1 %vm399_vm3, %v2237_v47 }
 0x91f   :  { %3519 = vmatpush3.bf16.msra.mxu1 %v3716_v46  ;;  %3522 = vmatprep.mubr.msk.bf16.mxu1 %vm3807_vm5, %v3806_v53 }
 0x920   :  { %3520 = vmatprep.subr.bf16.mxu1 %v3806_v53 }
 0x922   :  { %v4505_v51 = vpop.f32.mrb[32].mxu0 }
 0x923   :  { %v4507_v54 = vpop.f32.mrb[33].mxu0  ;;  %v2552_v31 = vmax.f32 %v3476_v27, %v4505_v51  ;;  %v2556_v24 = vadd.f32 %v4505_v51, %v3476_v27  ;;  %3521 = vmatpush3.bf16.msra.mxu1 %v3717_v49  ;;  %v3722_v49 = vld [vmem:[%s4765_s17 + $0x40] sm:$0xff]  }
 0x924   :  { %v2238_v5 = vpack.c.bf16 %v4505_v51, %v4507_v54  ;;  %v2551_v21 = vmax.f32 %v1975_v22, %v4507_v54  ;;  %v2555_v26 = vadd.f32 %v4507_v54, %v1975_v22  ;;  %3526 = vmatprep.subr.bf16.mxu1 %v3806_v53 }
 0x925   :  { %v4517_v55 = vmax.f32 %v2552_v31, %v4489_v2  ;;  %v2558_v57 = vadd.f32 %v4489_v2, %v2556_v24 }
 0x926   :  { %v4521_v58 = vmax.f32 %v2551_v21, %v4491_v43  ;;  %v2557_v60 = vadd.f32 %v2555_v26, %v4491_v43  ;;  %v3723_v26 = vld [vmem:[%s4765_s17 + $0x48] sm:$0xff]  }
 0x927   :  { %v4524_v1 = vmul.f32 0.33333334, %v2558_v57  ;;  %v2679_v29 = vsel %vm399_vm3, %v4517_v55, 0.0 }
 0x928   :  { %v4531_v7 = vmul.f32 0.33333334, %v2557_v60  ;;  %v2678_v8 = vsel %vm399_vm3, %v4521_v58, 0.0 }
 0x929   :  { %v2721_v61 = vsel %vm399_vm3, %v4524_v1, 0.0  ;;  %v2680_v12 = vadd.f32 %v2679_v29, %v2678_v8 }
 0x92a   :  { %v2720_v9 = vsel %vm399_vm3, %v4531_v7, 0.0  ;;  %3523 = vmatmul.mubr.msk.bf16.vlgmr.msra.gmra.mrb[16].mxu1 %vm399_vm3, %v2236_v44  ;;  %v4540_v34 = vpop.f32.mrb[34].mxu0 }
 0x92b   :  { %v2681_v14 = vrot.slane %v2680_v12, 4  ;;  %v2722_v59 = vadd.f32 %v2721_v61, %v2720_v9  ;;  %3527 = vmatpush3.bf16.msra.mxu1 %v3718_v3  ;;  %3530 = vmatprep.mubr.msk.bf16.mxu1 %vm3807_vm5, %v3806_v53  ;;  %v4547_v36 = vpop.f32.mrb[35].mxu0 }
 0x92c   :  { %3528 = vmatprep.subr.bf16.mxu1 %v3806_v53  ;;  %v2240_v16 = vpack.c.bf16 %v4540_v34, %v4547_v36 }
 0x92d   :  { %v2682_v13 = vadd.f32 %v2681_v14, %v2680_v12  ;;  %v2723_v17 = vrot.slane %v2722_v59, 4 }
 0x92f   :  { %v2683_v18 = vrot.slane %v2682_v13, 2  ;;  %v2724_v6 = vadd.f32 %v2723_v17, %v2722_v59  ;;  %3529 = vmatpush3.bf16.msra.mxu1 %v3719_v15  ;;  %v4589_v15 = vld [vmem:[%s4766_s18] sm:$0x1f]  ;;  %s3808_s18 = smov 96  }
 0x930   :  { %3534 = vmatprep.subr.bf16.mxu1 %v3806_v53 }
 0x931   :  { %v2684_v32 = vadd.f32 %v2683_v18, %v2682_v13  ;;  %v2725_v56 = vrot.slane %v2724_v6, 2 }
 0x933   :  { %v2685_v20 = vrot.slane %v2684_v32, 1  ;;  %v2726_v23 = vadd.f32 %v2725_v56, %v2724_v6 }
 0x935   :  { %v2686_v28 = vadd.f32 %v2685_v20, %v2684_v32  ;;  %v2727_v30 = vrot.slane %v2726_v23, 1 }
 0x936   :  { %3531 = vmatmul.mubr.msk.bf16.vlgmr.msra.gmra.mrb[16].mxu1 %vm399_vm3, %v2238_v5 }
 0x937   :  { %v2687_v11 = vmul.f32 0.0625, %v2686_v28  ;;  %v2728_v10 = vadd.f32 %v2727_v30, %v2726_v23  ;;  %3535 = vmatpush3.bf16.msra.mxu1 %v3720_v25  ;;  %3538 = vmatprep.mubr.msk.bf16.mxu1 %vm3807_vm5, %v3806_v53 }
 0x938   :  { %3536 = vmatprep.subr.bf16.mxu1 %v3806_v53 }
 0x939   :  { %v2688_v0 = vsub.f32 %v4521_v58, %v2687_v11  ;;  %v2689_v33 = vsub.f32 %v4517_v55, %v2687_v11  ;;  %v2729_v35 = vmul.f32 0.0625, %v2728_v10 }
 0x93b   :  { %v2690_v39 = vmul.f32 %v2688_v0, %v2688_v0  ;;  %v2691_v52 = vmul.f32 %v2689_v33, %v2689_v33  ;;  %v2730_v41 = vsub.f32 %v4531_v7, %v2729_v35  ;;  %v2731_v63 = vsub.f32 %v4524_v1, %v2729_v35  ;;  %3537 = vmatpush3.bf16.msra.mxu1 %v3721_v19 }
 0x93c   :  { %3542 = vmatprep.subr.bf16.mxu1 %v3806_v53 }
 0x93d   :  { %v2692_v38 = vsel %vm399_vm3, %v2690_v39, 0.0  ;;  %v2693_v42 = vsel %vm399_vm3, %v2691_v52, 0.0  ;;  %v2732_v44 = vmul.f32 %v2730_v41, %v2730_v41  ;;  %v2733_v27 = vmul.f32 %v2731_v63, %v2731_v63 }
 0x93e   :  { %v2694_v22 = vadd.f32 %v2693_v42, %v2692_v38 }
 0x93f   :  { %v2734_v46 = vsel %vm399_vm3, %v2732_v44, 0.0  ;;  %v2735_v47 = vsel %vm399_vm3, %v2733_v27, 0.0 }
 0x940   :  { %v2695_v31 = vrot.slane %v2694_v22, 4  ;;  %v2736_v24 = vadd.f32 %v2735_v47, %v2734_v46 }
 0x942   :  { %v2696_v5 = vadd.f32 %v2695_v31, %v2694_v22  ;;  %v2737_v21 = vrot.slane %v2736_v24, 4  ;;  %3539 = vmatmul.mubr.msk.bf16.vlgmr.msra.gmra.mrb[16].mxu1 %vm399_vm3, %v2239_v45 }
 0x943   :  { %3543 = vmatpush3.bf16.msra.mxu1 %v3722_v49  ;;  %3546 = vmatprep.mubr.msk.bf16.mxu1 %vm3807_vm5, %v3806_v53 }
 0x944   :  { %v2697_v57 = vrot.slane %v2696_v5, 2  ;;  %v2738_v60 = vadd.f32 %v2737_v21, %v2736_v24  ;;  %3544 = vmatprep.subr.bf16.mxu1 %v3806_v53 }
 0x946   :  { %v2698_v29 = vadd.f32 %v2697_v57, %v2696_v5  ;;  %v2739_v3 = vrot.slane %v2738_v60, 2 }
 0x947   :  { %3545 = vmatpush3.bf16.msra.mxu1 %v3723_v26 }
 0x948   :  { %v2699_v8 = vrot.slane %v2698_v29, 1  ;;  %v2740_v61 = vadd.f32 %v2739_v3, %v2738_v60 }
 0x94a   :  { %v2700_v2 = vadd.f32 %v2699_v8, %v2698_v29  ;;  %v2741_v43 = vrot.slane %v2740_v61, 1 }
 0x94c   :  { %v2701_v45 = vmul.f32 0.0625, %v2700_v2  ;;  %v2742_v12 = vadd.f32 %v2741_v43, %v2740_v61 }
 0x94e   :  { %v2702_v9 = vadd.f32 1e-05, %v2701_v45  ;;  %v2743_v34 = vmul.f32 0.0625, %v2742_v12  ;;  %3547 = vmatmul.mubr.msk.bf16.vlgmr.msra.gmra.mrb[16].mxu1 %vm399_vm3, %v2240_v16 }
 0x950   :  { %3742 = vrsqrt.f32 %v2702_v9  ;;  %v2744_v14 = vadd.f32 1e-05, %v2743_v34 }
 0x952   :  { %3744 = vrsqrt.f32 %v2744_v14 }
 0x95a   :  { %v3743_v59 = vpop.eup %3742 }
 0x95b   :  { %v2704_v36 = vmul.f32 %v3743_v59, %v4589_v15 }
 0x95c   :  { %v3745_v13 = vpop.eup %3744 }
 0x95d   :  { %v2708_v17 = vrot.slane %v2704_v36, %v4231_v62  ;;  %v2711_v18 = vmul.f32 %v2704_v36, %v2687_v11  ;;  %v2746_v6 = vmul.f32 %v3745_v13, %v4589_v15 }
 0x95f   :  { %v4595_v32 = vmul.f32 %v2708_v17, %v4517_v55  ;;  %v4598_v16 = vrot.slane %v2711_v18, %v4231_v62  ;;  %v2750_v56 = vrot.slane %v2746_v6, %v4241_v4  ;;  %v2753_v20 = vmul.f32 %v2746_v6, %v2729_v35 }
 0x960   :  { %v4602_v23 = vmul.f32 %v2708_v17, %v4521_v58 }
 0x961   :  { %v2717_v25 = vsub.f32 %v4595_v32, %v4598_v16  ;;  %v4607_v28 = vmul.f32 %v2750_v56, %v4524_v1  ;;  %v4610_v30 = vrot.slane %v2753_v20, %v4241_v4  ;;  %v4613_v55 = vmul.f32 %v2750_v56, %v4531_v7 }
 0x962   :  { %v2716_v62 = vsub.f32 %v4602_v23, %v4598_v16  ;;  %v3810_v32 = vmov 0.0|0.0  }
 0x963   :  { %v2759_v11 = vsub.f32 %v4607_v28, %v4610_v30  ;;  %v2758_v58 = vsub.f32 %v4613_v55, %v4610_v30 }
 0xa21   :  { %v4621_v10 = vpop.f32.mrb[16].mxu1 }
 0xa22   :  { %v3548_v1 = vpop.f32.mrb[17].mxu1  ;;  %v2568_v4 = vsel %vm399_vm3, %v4621_v10, 0.0  ;;  %v2613_v7 = vsel %vm2612_vm6, %v4621_v10, 0.0 }
 0xa23   :  { %v4623_v19 = vpop.f32.mrb[18].mxu1 }
 0xa24   :  { %v2569_v0 = vsel %vm399_vm3, %v4623_v19, 0.0  ;;  %v2614_v33 = vsel %vm2612_vm6, %v4623_v19, 0.0  ;;  %v3549_v35 = vpop.f32.mrb[19].mxu1 }
 0xa25   :  { %v2570_v39 = vadd.f32 %v2569_v0, %v2568_v4  ;;  %v2615_v52 = vadd.f32 %v2614_v33, %v2613_v7 }
 0xa27   :  { %v2571_v41 = vrot.slane %v2570_v39, 4  ;;  %v2616_v63 = vrot.slane %v2615_v52, 4 }
 0xa29   :  { %v2572_v38 = vadd.f32 %v2571_v41, %v2570_v39  ;;  %v2617_v42 = vadd.f32 %v2616_v63, %v2615_v52 }
 0xa2b   :  { %v2573_v44 = vrot.slane %v2572_v38, 2  ;;  %v2618_v27 = vrot.slane %v2617_v42, 2 }
 0xa2d   :  { %v2574_v22 = vadd.f32 %v2573_v44, %v2572_v38  ;;  %v2619_v46 = vadd.f32 %v2618_v27, %v2617_v42  ;;  %v2565_v27 = vrot.slane %v4589_v15, %v3985_v50 }
 0xa2f   :  { %v2575_v47 = vrot.slane %v2574_v22, 1  ;;  %v2620_v49 = vrot.slane %v2619_v46, 1 }
 0xa31   :  { %v2576_v31 = vadd.f32 %v2575_v47, %v2574_v22  ;;  %v2621_v24 = vadd.f32 %v2620_v49, %v2619_v46 }
 0xa33   :  { %v2577_v5 = vmul.f32 0.0625, %v2576_v31  ;;  %v4633_v21 = vmul.f32 0.0625, %v2621_v24  ;;  %v2567_v24 = vmul.f32 %v4505_v51, %v2565_v27 }
 0xa35   :  { %v2578_v26 = vsub.f32 %v4621_v10, %v2577_v5  ;;  %v2579_v57 = vsub.f32 %v4623_v19, %v2577_v5  ;;  %v2623_v60 = vsub.f32 %v4621_v10, %v4633_v21  ;;  %v2624_v29 = vsub.f32 %v4623_v19, %v4633_v21 }
 0xa37   :  { %v2580_v3 = vmul.f32 %v2578_v26, %v2578_v26  ;;  %v2581_v8 = vmul.f32 %v2579_v57, %v2579_v57  ;;  %v2625_v61 = vmul.f32 %v2623_v60, %v2623_v60  ;;  %v2626_v2 = vmul.f32 %v2624_v29, %v2624_v29 }
 0xa38   :  { %v2566_v57 = vmul.f32 %v2565_v27, %v4507_v54 }
 0xa39   :  { %v2582_v43 = vsel %vm399_vm3, %v2580_v3, 0.0  ;;  %v2583_v45 = vsel %vm399_vm3, %v2581_v8, 0.0  ;;  %v2627_v12 = vsel %vm2612_vm6, %v2625_v61, 0.0  ;;  %v2628_v9 = vsel %vm2612_vm6, %v2626_v2, 0.0 }
 0xa3a   :  { %v2584_v34 = vadd.f32 %v2583_v45, %v2582_v43  ;;  %v2629_v14 = vadd.f32 %v2628_v9, %v2627_v12 }
 0xa3c   :  { %v2585_v59 = vrot.slane %v2584_v34, 4  ;;  %v2630_v36 = vrot.slane %v2629_v14, 4 }
 0xa3e   :  { %v2586_v13 = vadd.f32 %v2585_v59, %v2584_v34  ;;  %v2631_v17 = vadd.f32 %v2630_v36, %v2629_v14 }
 0xa40   :  { %v2587_v18 = vrot.slane %v2586_v13, 2  ;;  %v2632_v6 = vrot.slane %v2631_v17, 2 }
 0xa42   :  { %v2588_v56 = vadd.f32 %v2587_v18, %v2586_v13  ;;  %v2633_v20 = vadd.f32 %v2632_v6, %v2631_v17 }
 0xa44   :  { %v2589_v1 = vrot.slane %v2588_v56, 1  ;;  %v2634_v4 = vrot.slane %v2633_v20, 1 }
 0xa46   :  { %v2590_v7 = vadd.f32 %v2589_v1, %v2588_v56  ;;  %v2635_v0 = vadd.f32 %v2634_v4, %v2633_v20 }
 0xa48   :  { %v2591_v33 = vmul.f32 0.0625, %v2590_v7  ;;  %v2636_v35 = vmul.f32 0.0625, %v2635_v0 }
 0xa4a   :  { %v2592_v39 = vadd.f32 1e-05, %v2591_v33  ;;  %v2637_v52 = vadd.f32 1e-05, %v2636_v35 }
 0xa4c   :  { %3746 = vrsqrt.f32 %v2637_v52 }
 0xa4d   :  { %3748 = vrsqrt.f32 %v2592_v39 }
 0xa56   :  { %v3747_v41 = vpop.eup %3746 }
 0xa57   :  { %v3749_v63 = vpop.eup %3748  ;;  %2640 = vrot.lane.b32.xlu1 %v3747_v41, %s3808_s18 }
 0xa58   :  { %v2594_v38 = vmul.f32 %v3749_v63, %v4589_v15 }
 0xa5a   :  { %v2598_v42 = vrot.slane %v2594_v38, %v4339_v40  ;;  %v2601_v44 = vmul.f32 %v2594_v38, %v2577_v5 }
 0xa5c   :  { %v2600_v22 = vmul.f32 %v2598_v42, %v4623_v19  ;;  %v2605_v46 = vrot.slane %v2601_v44, %v4339_v40  ;;  %v2599_v47 = vmul.f32 %v2598_v42, %v4621_v10  ;;  %v3724_v40 = vld [vmem:[%s4767_s19] sm:$0xff]  }
 0xa5d   :  { %3551 = vmatpush3.bf16.msra.mxu0 %v3724_v40 }
 0xa5e   :  { %v2607_v49 = vsub.f32 %v2600_v22, %v2605_v46  ;;  %v2606_v31 = vsub.f32 %v2599_v47, %v2605_v46  ;;  %3552 = vmatprep.subr.bf16.mxu0 %v3806_v53 }
 0xa60   :  { %v2609_v26 = vmax.f32 %v2607_v49, 0.0  ;;  %v2608_v60 = vmax.f32 %v2606_v31, 0.0  ;;  %v2849_v31 = vld [vmem:[%s4768_s20] sm:$0x1] }
 0xa61   :  { %3553 = vmatpush3.bf16.msra.mxu0 %v3725_v48  ;;  %v2963_v48 = vld [vmem:[%s4772_s24 + $0x8] sm:$0xff] }
 0xa62   :  { %v2611_v29 = vadd.f32 %v2609_v26, %v2567_v24  ;;  %v2610_v3 = vadd.f32 %v2608_v60, %v2566_v57  ;;  %3656 = vmatprep.subr.bf16.mxu0 %v3810_v32  ;;  %v2851_v57 = vld [vmem:[%s4769_s21] sm:$0x1] }
 0xac9   :  { %v2641_v5 = vpop.permute.xlu1 %2640 }
 0xaca   :  { %v2643_v8 = vmul.f32 %v2641_v5, %v4589_v15 }
 0xacc   :  { %v2647_v61 = vrot.slane %v2643_v8, %v1385_v37  ;;  %v2655_v2 = vrot.slane %v2643_v8, 2 }
 0xace   :  { %2656 = vrot.lane.b32.xlu0 %v2655_v2, %s3809_s6  ;;  %2649 = vrot.lane.b32.xlu1 %v2647_v61, %s3809_s6 }
 0xb40   :  { %v2657_v51 = vpop.permute.xlu0 %2656  ;;  %v2650_v43 = vpop.permute.xlu1 %2649 }
 0xb41   :  { %v2659_v54 = vmul.f32 %v2657_v51, %v4633_v21  ;;  %v2652_v15 = vmul.f32 %v2650_v43, %v4621_v10  ;;  %v2653_v45 = vmul.f32 %v2650_v43, %v4623_v19 }
 0xb43   :  { %v2663_v37 = vrot.slane %v2659_v54, %v3985_v50  ;;  %v2962_v54 = vld [vmem:[%s4772_s24] sm:$0xff] }
 0xb45   :  { %v2664_v12 = vsub.f32 %v2652_v15, %v2663_v37  ;;  %v2665_v9 = vsub.f32 %v2653_v45, %v2663_v37  ;;  %v2872_v15 = vld [vmem:[%s4770_s22] sm:$0x3]  ;;  %v3660_v45 = vpack.c.bf16 %v2963_v48, %v2962_v54 }
 0xb47   :  { %v2667_v34 = vmax.f32 %v2665_v9, 0.0  ;;  %v2666_v14 = vmax.f32 %v2664_v12, 0.0  ;;  %v2964_v12 = vld [vmem:[%s4772_s24 + $0x10] sm:$0xff]  ;;  %v2965_v9 = vld [vmem:[%s4772_s24 + $0x18] sm:$0xff]  ;;  %s3811_s24 = smov [#allocation4]  }
 0xb48   :  { %s3064_s0 = sshll.u32 %s3811_s24, 4  ;;  %s3065_s0 = int_to_ptr.vmem [resolvable:$true] %s3064_s0 }
 0xb49   :  { %2672 = vrot.lane.b32.xlu1 %v2667_v34, %s3808_s18  ;;  %2670 = vrot.lane.b32.xlu0 %v2666_v14, %s3808_s18  ;;  %v3663_v34 = vpack.c.bf16 %v2965_v9, %v2964_v12  ;;  %v2946_v14 = vld [vmem:[%s4771_s23] sm:$0x1]  ;;  %s3756_s23 = scalar_lea.vmem %s3065_s0, 32  ;;  %p3761_p1 = scmp.lt.s32.totalorder %s3065_s0, %s3065_s0 }
 0xb4a   :  { %p3757_p0 = scmp.ne.s32.totalorder %s3065_s0, %s3756_s23  ;;  %p3762_p2 = scmp.lt.s32.totalorder %s3756_s23, %s3756_s23 }
 0xb4c   :  { %p3763_p3 = por %p3762_p2, %p3761_p1 }
 0xb4e   :  { %p3764_p4 = pnand %p3763_p3, %p3757_p0 }
 0xbbb   :  { %v2673_v21 = vpop.permute.xlu1 %2672  ;;  %v2671_v59 = vpop.permute.xlu0 %2670 }
 0xbbc   :  { %v2677_v36 = vadd.f32 %v2673_v21, %v2611_v29  ;;  %v2676_v13 = vadd.f32 %v2671_v59, %v2610_v3  ;;  %v2947_v21 = vsub.f32 0.0, %v2946_v14 }
 0xbbe   :  { %v2719_v17 = vadd.f32 %v2717_v25, %v2677_v36  ;;  %v2718_v10 = vadd.f32 %v2716_v62, %v2676_v13  ;;  %v2948_v59 = vmul.f32 1.442695, %v2947_v21 }
 0xbc0   :  { %v2761_v19 = vadd.f32 %v2759_v11, %v2719_v17  ;;  %v2760_v18 = vadd.f32 %v2758_v58, %v2718_v10 }
 0xbc2   :  { %v2762_v6 = vpack.c.bf16 %v2761_v19, %v2760_v18 }
 0xbc4   :  { %3555 = vmatmul.mubr.msk.bf16.vlgmr.msra.gmra.mrb[36].mxu0 %vm399_vm3, %v2762_v6 }
 0xbc5   :  { %3562 = vmatprep.mubr.msk.f32.mxu0 %vm3807_vm5, %v3806_v53 }
 0xc97   :  { %v2816_v25 = vpop.f32.mrb[36].mxu0 }
 0xc98   :  { %v3556_v56 = vpop.f32.mrb[37].mxu0  ;;  %v2823_v23 = vsel %vm399_vm3, %v2816_v25, 0.0 }
 0xc99   :  { %v2819_v16 = vpop.f32.mrb[38].mxu0 }
 0xc9a   :  { %v2824_v28 = vsel %vm399_vm3, %v2819_v16, 0.0  ;;  %v3557_v62 = vpop.f32.mrb[39].mxu0 }
 0xc9b   :  { %v2825_v11 = vadd.f32 %v2824_v28, %v2823_v23 }
 0xc9d   :  { %v2826_v20 = vrot.slane %v2825_v11, 4 }
 0xc9f   :  { %v2827_v30 = vadd.f32 %v2826_v20, %v2825_v11 }
 0xca1   :  { %v2828_v55 = vrot.slane %v2827_v30, 2 }
 0xca3   :  { %v2829_v58 = vadd.f32 %v2828_v55, %v2827_v30 }
 0xca5   :  { %v2830_v1 = vrot.slane %v2829_v58, 1 }
 0xca7   :  { %v2831_v4 = vadd.f32 %v2830_v1, %v2829_v58 }
 0xca9   :  { %v2832_v7 = vmul.f32 0.0625, %v2831_v4 }
 0xcab   :  { %v2833_v0 = vsub.f32 %v2816_v25, %v2832_v7  ;;  %v2834_v33 = vsub.f32 %v2819_v16, %v2832_v7 }
 0xcad   :  { %v2835_v35 = vmul.f32 %v2833_v0, %v2833_v0  ;;  %v2836_v39 = vmul.f32 %v2834_v33, %v2834_v33 }
 0xcaf   :  { %v2837_v52 = vsel %vm399_vm3, %v2835_v35, 0.0  ;;  %v2838_v41 = vsel %vm399_vm3, %v2836_v39, 0.0 }
 0xcb0   :  { %v2839_v63 = vadd.f32 %v2838_v41, %v2837_v52 }
 0xcb2   :  { %v2840_v38 = vrot.slane %v2839_v63, 4 }
 0xcb4   :  { %v2841_v42 = vadd.f32 %v2840_v38, %v2839_v63 }
 0xcb6   :  { %v2842_v44 = vrot.slane %v2841_v42, 2 }
 0xcb8   :  { %v2843_v27 = vadd.f32 %v2842_v44, %v2841_v42 }
 0xcba   :  { %v2844_v22 = vrot.slane %v2843_v27, 1 }
 0xcbc   :  { %v2845_v46 = vadd.f32 %v2844_v22, %v2843_v27 }
 0xcbe   :  { %v2846_v47 = vmul.f32 0.0625, %v2845_v46 }
 0xcc0   :  { %v2847_v49 = vadd.f32 1e-05, %v2846_v47 }
 0xcc2   :  { %3750 = vrsqrt.f32 %v2847_v49 }
 0xcc3   :  { %3752 = vpow2.f32 %v2948_v59 }
 0xccc   :  { %v3751_v24 = vpop.eup %3750 }
 0xccd   :  { %v2850_v26 = vmul.f32 %v3751_v24, %v2849_v31  ;;  %v3753_v36 = vpop.eup %3752 }
 0xccf   :  { %v2852_v60 = vmul.f32 %v2850_v26, %v2832_v7  ;;  %v2858_v29 = vrot.slane %v2850_v26, %v3985_v50 }
 0xcd1   :  { %v2853_v3 = vsub.f32 %v2851_v57, %v2852_v60  ;;  %v2860_v5 = vmul.f32 %v2858_v29, %v2816_v25  ;;  %v2861_v8 = vmul.f32 %v2858_v29, %v2819_v16 }
 0xcd3   :  { %v2866_v61 = vrot.slane %v2853_v3, %v3985_v50 }
 0xcd5   :  { %v2868_v2 = vadd.f32 %v2866_v61, %v2860_v5  ;;  %v2869_v40 = vadd.f32 %v2866_v61, %v2861_v8 }
 0xcd7   :  { %v2871_v51 = vmax.f32 %v2869_v40, 0.0  ;;  %v2870_v43 = vmax.f32 %v2868_v2, 0.0 }
 0xcd9   :  { %v3657_v37 = vpack.c.bf16 %v2871_v51, %v2870_v43 }
 0xcdb   :  { %3658 = vmatpush3.bf16.msra.mxu0 %v3657_v37 }
 0xcdc   :  { %3659 = vmatprep.subr.bf16.mxu0 %v3810_v32 }
 0xcde   :  { %3563 = vmatmul.mubr.msk.f32.vlgmr.msra.gmra.mrb[40].mxu0 %vm195_vm2, %v2872_v15 }
 0xcdf   :  { %3661 = vmatpush3.bf16.msra.mxu0 %v3660_v45  ;;  %3573 = vmatprep.mubr.msk.f32.mxu0 %vm3807_vm5, %v3806_v53  ;;  %v2950_v53 = vadd.f32 1.0, %v3753_v36 }
 0xce0   :  { %3662 = vmatprep.subr.bf16.mxu0 %v3810_v32 }
 0xce1   :  { %3754 = vrcp.f32 %v2950_v53 }
 0xce3   :  { %3664 = vmatpush3.bf16.msra.mxu0 %v3663_v34 }
 0xceb   :  { %v3755_v13 = vpop.eup %3754 }
 0xcec   :  { %v2957_v17 = vrot.slane %v3755_v13, %v3985_v50 }
 0xdb1   :  { %v2942_v10 = vpop.f32.mrb[40].mxu0 }
 0xdb2   :  { %v2959_v19 = vmul.f32 %v2957_v17, %v2942_v10  ;;  %v3564_v18 = vpop.f32.mrb[41].mxu0 }
 0xdb4   :  { %3574 = vmatmul.mubr.msk.f32.vlgmr.msra.gmra.mrb[42].mxu0 %vm399_vm3, %v2959_v19  ;;  %2961 = vst.msk [vmem:[#allocation4] sm:$0x3] %vm2960_vm7, %v2959_v19 }
 0xdb5   :  { %3767 = shalt.err (!%p3764_p4)
}
 0xdb6   :  { %s3768_s1 = scalar_lea.hbm %s4775_s27, 32 }
 0xdb7   :  { %p3769_p5 = scmp.ne.s32.totalorder %s4775_s27, %s3768_s1  ;;  %p3772_p6 = scmp.lt.u32.totalorder %s3768_s1, %s4775_s27 }
 0xdb9   :  { %p3774_p7 = pnand %p3772_p6, %p3769_p5 }
 0xdbb   :  { %3777 = shalt.err (!%p3774_p7)
}
 0xdbc   :  { %3067 = dma.vmem_to_hbm [thread:$0]  %s3065_s0, 32, %s4775_s27, [#allocation5]   ;;  %v3202_v50 = vld [vmem:[%s4773_s25] ss:$0 sm:$0xff]  ;;  %vm3046_vm8 = vcmask 25600  }
 0xdbd   :  { %s3812_s3 = smov [#allocation2]  }
 0xdbe   :  { %s3054_s7 = sshll.u32 %s3812_s3, 4  ;;  %s3055_s7 = int_to_ptr.vmem [resolvable:$true] %s3054_s7 }
 0xdbf   :  { %s3778_s10 = scalar_lea.vmem %s3055_s7, 32  ;;  %p3783_p9 = scmp.lt.s32.totalorder %s3055_s7, %s3055_s7 }
 0xdc0   :  { %p3779_p8 = scmp.ne.s32.totalorder %s3055_s7, %s3778_s10  ;;  %p3784_p10 = scmp.lt.s32.totalorder %s3778_s10, %s3778_s10 }
 0xdc2   :  { %p3785_p11 = por %p3784_p10, %p3783_p9 }
 0xdc4   :  { %p3786_p12 = pnand %p3785_p11, %p3779_p8 }
 0xe87   :  { %v3042_v6 = vpop.f32.mrb[42].mxu0 }
 0xe88   :  { %v3043_v32 = vadd.f32 %v3202_v50, %v3042_v6  ;;  %v3575_v25 = vpop.f32.mrb[43].mxu0 }
 0xe8a   :  { %3047 = vst.msk [vmem:[#allocation2] sm:$0x3] %vm3046_vm8, %v3043_v32 }
 0xe8b   :  { %3789 = shalt.err (!%p3786_p12)
}
 0xe8c   :  { %s3790_s13 = scalar_lea.hbm %s4774_s26, 32 }
 0xe8d   :  { %p3791_p13 = scmp.ne.s32.totalorder %s4774_s26, %s3790_s13  ;;  %p3794_p0 = scmp.lt.u32.totalorder %s3790_s13, %s4774_s26 }
 0xe8f   :  { %p3796_p1 = pnand %p3794_p0, %p3791_p13 }
 0xe91   :  { %3799 = shalt.err (!%p3796_p1)
}
 0xe92   :  { %3057 = dma.vmem_to_hbm [thread:$0]  %s3055_s7, 32, %s4774_s26, [#allocation3]  }
 0xe93   :  { %3800 = dma.done.wait [#allocation3], 32  }
 0xe94   :  { %3801 = vsyncadd [#allocation3], 4294967264 }
 0xe95   :  { %3802 = dma.done.wait [#allocation5], 32  }
 0xe96   :  { %3803 = vsyncadd [#allocation5], 4294967264 }
 0xe97   :  { %3074 = vsyncpa [#allocation3], 1 }
 0xe98   :  { %3075 = vsyncpa [#allocation5], 1 }

</bundles_post_ra>
